<compile_context>
chip_gen: v5e
topology: v5e:2x2
jax: 0.10.0
libtpu: 0.0.40
codegen_flags: <defaults>
</compile_context>

<pallas_src>
import jax
import jax.numpy as jnp
from jax import lax
from jax.experimental import pallas as pl
from jax.experimental.pallas import tpu as pltpu


# ---------------------------------------------------------------------------
# VMEM budgeting (generation-aware)
# ---------------------------------------------------------------------------
def _vmem_capacity_bytes():
    try:
        cap = int(pltpu.get_tpu_info().vmem_capacity_bytes)
        if cap > 0:
            return cap
    except Exception:
        pass
    return 64 * 2**20  # conservative default: v7x has 64 MiB per TensorCore


def _tile_bytes(tile_h, W, C, itemsize):
    """Per-grid-step VMEM residency estimate for a given H-tile size."""
    row = W * C
    win = (tile_h + 2) * row
    return (
        2 * 2 * tile_h * row * itemsize      # x1, x2 tiles (double-buffered)
        + 2 * 2 * 2 * row * itemsize         # halo rows (double-buffered)
        + 2 * tile_h * row * itemsize        # output tile (double-buffered)
        + win * 4                            # product-window VMEM scratch (f32)
        + 2 * (9 * C * C + C) * itemsize     # weights + bias buffers
        + 6 * win * 4                        # in-kernel f32 temporaries / spill room
    )


def _pick_tile_h(H, W, C, itemsize, budget_bytes):
    """Largest divisor of H whose working set fits the budget (no H padding)."""
    best = 1
    for d in range(1, H + 1):
        if H % d == 0 and _tile_bytes(d, W, C, itemsize) <= budget_bytes:
            best = d
    return best


def _vmem_limit(tile_h, W, C, itemsize, capacity):
    need = _tile_bytes(tile_h, W, C, itemsize)
    return int(min(max(2 * need, 32 * 2**20), int(0.8 * capacity)))


# ---------------------------------------------------------------------------
# Kernel
# ---------------------------------------------------------------------------
def fam_kernel(x1_ref, x2_ref, halo_ref, w_ref, b_ref, o_ref, xg_ref):
    # x1_ref / x2_ref : (1, TH, W, C)     current H-tile of both inputs
    # halo_ref        : (1, 1, 2, W, C)   product rows just above / below this tile
    # w_ref           : (3, 3, C, C)      HWIO conv weights (constant index_map)
    # b_ref           : (1, C)            conv bias
    # o_ref           : (1, TH, W, C)     output tile
    # xg_ref          : (TH+2, W, C) f32  scratch: zero-padded product window
    TH, W, C = o_ref.shape[1], o_ref.shape[2], o_ref.shape[3]

    # Build the halo-padded product window directly in scratch (no concat copy).
    halo = halo_ref[0, 0].astype(jnp.float32)                     # (2, W, C)
    xg_ref[0:1] = halo[0:1]
    xg_ref[pl.ds(1, TH)] = x1_ref[0].astype(jnp.float32) * x2_ref[0].astype(jnp.float32)
    xg_ref[TH + 1:TH + 2] = halo[1:2]
    xg = xg_ref[...]                                              # (TH+2, W, C)

    # Edge-column multipliers, hoisted out of the tap loop: zero the column that
    # wraps around in the lane roll (matches the conv's zero padding along W).
    col = lax.broadcasted_iota(jnp.int32, (TH + 2, W, C), 1)
    left_ok = (col > 0).astype(jnp.float32)        # kills wrapped col at w == 0
    right_ok = (col < W - 1).astype(jnp.float32)   # kills wrapped col at w == W-1

    # 3x3 conv = 9 (TH*W, C) x (C, C) MXU matmuls, accumulated in a local value
    # (no VMEM read-modify-write; one result store at the end).
    acc = None
    for kw in range(3):
        if kw == 0:        # needs column w-1
            xs = pltpu.roll(xg, shift=1, axis=1) * left_ok
        elif kw == 1:      # center tap
            xs = xg
        else:              # needs column w+1 ; roll by -1 == roll by W-1 (non-negative)
            xs = pltpu.roll(xg, shift=W - 1, axis=1) * right_ok
        for kh in range(3):
            # kh slice is a free major-dim offset; reshape to (TH*W, C) is contiguous.
            lhs = xs[kh:kh + TH].reshape(TH * W, C)
            contrib = jnp.dot(lhs, w_ref[kh, kw],
                              preferred_element_type=jnp.float32)
            acc = contrib if acc is None else acc + contrib

    out = x1_ref[0].astype(jnp.float32) + (acc + b_ref[...]).reshape(TH, W, C)
    o_ref[0] = out.astype(o_ref.dtype)


# ---------------------------------------------------------------------------
# Wrapper
# ---------------------------------------------------------------------------
def fam_forward(x1, x2, w_hwio, bias, *, tile_h=None, vmem_budget_bytes=None):
    """x1, x2: (N, H, W, C) NHWC.  w_hwio: (3, 3, Cin, Cout).  bias: (Cout,)."""
    N, H, W, C = x1.shape
    assert x2.shape == x1.shape
    assert w_hwio.shape == (3, 3, C, C)
    assert bias.shape == (C,)
    orig_W = W

    # Keep the (W, C) minor pair relayout-free: pad W to a multiple of 8 only when
    # needed.  Padded columns are zero, so their conv contributions are zero and the
    # extra output columns are sliced off below (rare path; usually a no-op).
    if W % 8 != 0:
        wpad = 8 - W % 8
        x1 = jnp.pad(x1, ((0, 0), (0, 0), (0, wpad), (0, 0)))
        x2 = jnp.pad(x2, ((0, 0), (0, 0), (0, wpad), (0, 0)))
        W = W + wpad

    capacity = _vmem_capacity_bytes()
    if vmem_budget_bytes is None:
        vmem_budget_bytes = capacity // 2
    if tile_h is None:
        tile_h = _pick_tile_h(H, W, C, x1.dtype.itemsize, vmem_budget_bytes)
    else:
        # snap the requested tile to a divisor of H -> no H padding, no wasted tail work
        tile_h = max(d for d in range(1, min(int(tile_h), H) + 1) if H % d == 0)
    T = H // tile_h

    # Tiny halo side input: product rows just above / below each tile boundary
    # (zeros outside the image, matching the conv's padding=1).
    t_idx = jnp.arange(T)
    top_idx = t_idx * tile_h - 1
    bot_idx = (t_idx + 1) * tile_h
    top_c = jnp.clip(top_idx, 0, H - 1)
    bot_c = jnp.clip(bot_idx, 0, H - 1)
    top_rows = x1[:, top_c] * x2[:, top_c]                        # (N, T, W, C)
    bot_rows = x1[:, bot_c] * x2[:, bot_c]
    top_rows = jnp.where((top_idx >= 0)[None, :, None, None], top_rows, 0.0)
    bot_rows = jnp.where((bot_idx < H)[None, :, None, None], bot_rows, 0.0)
    halo = jnp.stack([top_rows, bot_rows], axis=2)                # (N, T, 2, W, C)

    out = pl.pallas_call(
        fam_kernel,
        out_shape=jax.ShapeDtypeStruct((N, H, W, C), x1.dtype),
        grid_spec=pltpu.PrefetchScalarGridSpec(
            num_scalar_prefetch=0,
            grid=(N, T),
            in_specs=[
                pl.BlockSpec((1, tile_h, W, C), lambda n, t: (n, t, 0, 0)),
                pl.BlockSpec((1, tile_h, W, C), lambda n, t: (n, t, 0, 0)),
                pl.BlockSpec((1, 1, 2, W, C), lambda n, t: (n, t, 0, 0, 0)),
                pl.BlockSpec((3, 3, C, C), lambda n, t: (0, 0, 0, 0)),   # resident
                pl.BlockSpec((1, C), lambda n, t: (0, 0)),               # resident
            ],
            out_specs=pl.BlockSpec((1, tile_h, W, C), lambda n, t: (n, t, 0, 0)),
            scratch_shapes=[pltpu.VMEM((tile_h + 2, W, C), jnp.float32)],
        ),
        compiler_params=pltpu.CompilerParams(
            dimension_semantics=("parallel", "parallel"),
            vmem_limit_bytes=_vmem_limit(tile_h, W, C, x1.dtype.itemsize, capacity),
        ),
    )(x1, x2, halo, w_hwio, bias.reshape(1, C))

    return out[:, :, :orig_W] if W != orig_W else out


# ---------------------------------------------------------------------------
# Pure-JAX reference (matches PyTorch semantics)
# ---------------------------------------------------------------------------
def fam_reference(x1, x2, w_hwio, bias):
    x = x1 * x2
    y = lax.conv_general_dilated(
        x.astype(jnp.float32), w_hwio.astype(jnp.float32),
        window_strides=(1, 1), padding=((1, 1), (1, 1)),
        dimension_numbers=("NHWC", "HWIO", "NHWC"))
    y = y + bias.reshape(1, 1, 1, -1)
    return x1 + y


if __name__ == "__main__":
    N, C, H, W = 2, 4, 16, 16
    key = jax.random.PRNGKey(0)
    k1, k2, kw_key, kb_key = jax.random.split(key, 4)

    # inputs in NCHW (PyTorch convention) -> transpose to NHWC for the kernel
    x1_nchw = jax.random.normal(k1, (N, C, H, W), dtype=jnp.float32)
    x2_nchw = jax.random.normal(k2, (N, C, H, W), dtype=jnp.float32)
    x1 = jnp.transpose(x1_nchw, (0, 2, 3, 1))
    x2 = jnp.transpose(x2_nchw, (0, 2, 3, 1))

    # Conv2d(C, C, 3) params (PyTorch weight is OIHW -> HWIO)
    fan_in = C * 3 * 3
    bound = 1.0 / (fan_in ** 0.5)
    w_oihw = jax.random.uniform(kw_key, (C, C, 3, 3), jnp.float32, -bound, bound)
    bias = jax.random.uniform(kb_key, (C,), jnp.float32, -bound, bound)
    w_hwio = jnp.transpose(w_oihw, (2, 3, 1, 0))

    # tile_h=8 -> two H-tiles per image: exercises the halo path and the (N, T) grid.
    out = fam_forward(x1, x2, w_hwio, bias, tile_h=8)
    out = jax.block_until_ready(out)

    ref = fam_reference(x1, x2, w_hwio, bias)
    assert out.shape == (N, H, W, C)
    err = float(jnp.max(jnp.abs(out - ref)))
    assert jnp.allclose(out, ref, atol=1e-4, rtol=1e-4), err

    print("KERNEL_OK")
</pallas_src>

<mosaic_0001>
module attributes {stable_mosaic.version = 11 : i64} {
  func.func @fam_kernel(%arg0: i32, %arg1: i32, %arg2: memref<1x8x16x4xf32, #tpu.memory_space<vmem>>, %arg3: memref<1x8x16x4xf32, #tpu.memory_space<vmem>>, %arg4: memref<1x1x2x16x4xf32, #tpu.memory_space<vmem>>, %arg5: memref<3x3x4x4xf32, #tpu.memory_space<vmem>>, %arg6: memref<1x4xf32, #tpu.memory_space<vmem>>, %arg7: memref<1x8x16x4xf32, #tpu.memory_space<vmem>>, %arg8: memref<10x16x4xf32, #tpu.memory_space<vmem>>) attributes {dimension_semantics = [#tpu.dimension_semantics<parallel>, #tpu.dimension_semantics<parallel>], iteration_bounds = array<i64: 2, 2>, scalar_prefetch = 0 : i64, scratch_operands = 1 : i64, tpu.core_type = #tpu.core_type<tc>, window_params = [{transform_indices = @transform_0, window_bounds = array<i64: 1, 8, 16, 4>}, {transform_indices = @transform_1, window_bounds = array<i64: 1, 8, 16, 4>}, {transform_indices = @transform_2, window_bounds = array<i64: 1, 1, 2, 16, 4>}, {pipeline_mode = #tpu.pipeline_mode<synchronous>, transform_indices = @transform_3, window_bounds = array<i64: 3, 3, 4, 4>}, {pipeline_mode = #tpu.pipeline_mode<synchronous>, transform_indices = @transform_4, window_bounds = array<i64: 1, 4>}, {transform_indices = @transform_5, window_bounds = array<i64: 1, 8, 16, 4>}]} {
    %c0 = arith.constant 0 : index
    %c0_0 = arith.constant 0 : index
    %c0_1 = arith.constant 0 : index
    %c0_2 = arith.constant 0 : index
    %c0_3 = arith.constant 0 : index
    %0 = vector.load %arg4[%c0, %c0_0, %c0_1, %c0_2, %c0_3] : memref<1x1x2x16x4xf32, #tpu.memory_space<vmem>>, vector<1x1x2x16x4xf32>
    %1 = vector.shape_cast %0 : vector<1x1x2x16x4xf32> to vector<2x16x4xf32>
    %2 = vector.extract_strided_slice %1 {offsets = [0, 0, 0], sizes = [1, 16, 4], strides = [1, 1, 1]} : vector<2x16x4xf32> to vector<1x16x4xf32>
    %c0_4 = arith.constant 0 : index
    %c0_5 = arith.constant 0 : index
    %c0_6 = arith.constant 0 : index
    %3 = vector.load %arg8[%c0_4, %c0_5, %c0_6] : memref<10x16x4xf32, #tpu.memory_space<vmem>>, vector<1x16x4xf32>
    tpu.vector_store %arg8[%c0_4, %c0_5, %c0_6], %2 {strides = array<i32>} : memref<10x16x4xf32, #tpu.memory_space<vmem>>, vector<1x16x4xf32>,
    %c0_7 = arith.constant 0 : index
    %c0_8 = arith.constant 0 : index
    %c0_9 = arith.constant 0 : index
    %c0_10 = arith.constant 0 : index
    %4 = vector.load %arg2[%c0_7, %c0_8, %c0_9, %c0_10] : memref<1x8x16x4xf32, #tpu.memory_space<vmem>>, vector<1x8x16x4xf32>
    %5 = vector.shape_cast %4 : vector<1x8x16x4xf32> to vector<8x16x4xf32>
    %c0_11 = arith.constant 0 : index
    %c0_12 = arith.constant 0 : index
    %c0_13 = arith.constant 0 : index
    %c0_14 = arith.constant 0 : index
    %6 = vector.load %arg3[%c0_11, %c0_12, %c0_13, %c0_14] : memref<1x8x16x4xf32, #tpu.memory_space<vmem>>, vector<1x8x16x4xf32>
    %7 = vector.shape_cast %6 : vector<1x8x16x4xf32> to vector<8x16x4xf32>
    %8 = arith.mulf %5, %7 : vector<8x16x4xf32>
    %c1 = arith.constant 1 : index
    %c0_15 = arith.constant 0 : index
    %c0_16 = arith.constant 0 : index
    %9 = vector.load %arg8[%c1, %c0_15, %c0_16] : memref<10x16x4xf32, #tpu.memory_space<vmem>>, vector<8x16x4xf32>
    tpu.vector_store %arg8[%c1, %c0_15, %c0_16], %8 {strides = array<i32>} : memref<10x16x4xf32, #tpu.memory_space<vmem>>, vector<8x16x4xf32>,
    %10 = vector.extract_strided_slice %1 {offsets = [1, 0, 0], sizes = [1, 16, 4], strides = [1, 1, 1]} : vector<2x16x4xf32> to vector<1x16x4xf32>
    %c9 = arith.constant 9 : index
    %c0_17 = arith.constant 0 : index
    %c0_18 = arith.constant 0 : index
    %11 = vector.load %arg8[%c9, %c0_17, %c0_18] : memref<10x16x4xf32, #tpu.memory_space<vmem>>, vector<1x16x4xf32>
    tpu.vector_store %arg8[%c9, %c0_17, %c0_18], %10 {strides = array<i32>} : memref<10x16x4xf32, #tpu.memory_space<vmem>>, vector<1x16x4xf32>,
    %c0_19 = arith.constant 0 : index
    %c0_20 = arith.constant 0 : index
    %c0_21 = arith.constant 0 : index
    %12 = vector.load %arg8[%c0_19, %c0_20, %c0_21] : memref<10x16x4xf32, #tpu.memory_space<vmem>>, vector<10x16x4xf32>
    %13 = tpu.iota {dimensions = array<i32: 1>} : vector<10x16x4xi32>
    %c0_i32 = arith.constant 0 : i32
    %14 = vector.broadcast %c0_i32 : i32 to vector<10x16x4xi32>
    %15 = arith.cmpi sgt, %13, %14 : vector<10x16x4xi32>
    %16 = arith.extui %15 : vector<10x16x4xi1> to vector<10x16x4xi32>
    %17 = arith.sitofp %16 : vector<10x16x4xi32> to vector<10x16x4xf32>
    %c15_i32 = arith.constant 15 : i32
    %18 = vector.broadcast %c15_i32 : i32 to vector<10x16x4xi32>
    %19 = arith.cmpi slt, %13, %18 : vector<10x16x4xi32>
    %20 = arith.extui %19 : vector<10x16x4xi1> to vector<10x16x4xi32>
    %21 = arith.sitofp %20 : vector<10x16x4xi32> to vector<10x16x4xf32>
    %c1_i32 = arith.constant 1 : i32
    %22 = tpu.dynamic_rotate %12 by %c1_i32 dim 1 : vector<10x16x4xf32>, i32 -> vector<10x16x4xf32>
    %23 = arith.mulf %22, %17 : vector<10x16x4xf32>
    %24 = vector.extract_strided_slice %23 {offsets = [0, 0, 0], sizes = [8, 16, 4], strides = [1, 1, 1]} : vector<10x16x4xf32> to vector<8x16x4xf32>
    %25 = vector.shape_cast %24 : vector<8x16x4xf32> to vector<128x4xf32>
    %c0_22 = arith.constant 0 : index
    %c0_23 = arith.constant 0 : index
    %c0_24 = arith.constant 0 : index
    %c0_25 = arith.constant 0 : index
    %26 = vector.load %arg5[%c0_22, %c0_23, %c0_24, %c0_25] : memref<3x3x4x4xf32, #tpu.memory_space<vmem>>, vector<1x1x4x4xf32>
    %27 = vector.shape_cast %26 : vector<1x1x4x4xf32> to vector<4x4xf32>
    %cst = arith.constant dense<0.000000e+00> : vector<128x4xf32>
    %28 = tpu.matmul %25, %27, %cst {dimension_numbers = #tpu.dot_dimension_numbers<[1], [0], [0], [1], [0, 0, 1, 1], [], []>} : vector<128x4xf32>, vector<4x4xf32>, vector<128x4xf32> -> vector<128x4xf32>
    %29 = vector.extract_strided_slice %23 {offsets = [1, 0, 0], sizes = [8, 16, 4], strides = [1, 1, 1]} : vector<10x16x4xf32> to vector<8x16x4xf32>
    %30 = vector.shape_cast %29 : vector<8x16x4xf32> to vector<128x4xf32>
    %c1_26 = arith.constant 1 : index
    %c0_27 = arith.constant 0 : index
    %c0_28 = arith.constant 0 : index
    %c0_29 = arith.constant 0 : index
    %31 = vector.load %arg5[%c1_26, %c0_27, %c0_28, %c0_29] : memref<3x3x4x4xf32, #tpu.memory_space<vmem>>, vector<1x1x4x4xf32>
    %32 = vector.shape_cast %31 : vector<1x1x4x4xf32> to vector<4x4xf32>
    %cst_30 = arith.constant dense<0.000000e+00> : vector<128x4xf32>
    %33 = tpu.matmul %30, %32, %cst_30 {dimension_numbers = #tpu.dot_dimension_numbers<[1], [0], [0], [1], [0, 0, 1, 1], [], []>} : vector<128x4xf32>, vector<4x4xf32>, vector<128x4xf32> -> vector<128x4xf32>
    %34 = arith.addf %28, %33 : vector<128x4xf32>
    %35 = vector.extract_strided_slice %23 {offsets = [2, 0, 0], sizes = [8, 16, 4], strides = [1, 1, 1]} : vector<10x16x4xf32> to vector<8x16x4xf32>
    %36 = vector.shape_cast %35 : vector<8x16x4xf32> to vector<128x4xf32>
    %c2 = arith.constant 2 : index
    %c0_31 = arith.constant 0 : index
    %c0_32 = arith.constant 0 : index
    %c0_33 = arith.constant 0 : index
    %37 = vector.load %arg5[%c2, %c0_31, %c0_32, %c0_33] : memref<3x3x4x4xf32, #tpu.memory_space<vmem>>, vector<1x1x4x4xf32>
    %38 = vector.shape_cast %37 : vector<1x1x4x4xf32> to vector<4x4xf32>
    %cst_34 = arith.constant dense<0.000000e+00> : vector<128x4xf32>
    %39 = tpu.matmul %36, %38, %cst_34 {dimension_numbers = #tpu.dot_dimension_numbers<[1], [0], [0], [1], [0, 0, 1, 1], [], []>} : vector<128x4xf32>, vector<4x4xf32>, vector<128x4xf32> -> vector<128x4xf32>
    %40 = arith.addf %34, %39 : vector<128x4xf32>
    %41 = vector.extract_strided_slice %12 {offsets = [0, 0, 0], sizes = [8, 16, 4], strides = [1, 1, 1]} : vector<10x16x4xf32> to vector<8x16x4xf32>
    %42 = vector.shape_cast %41 : vector<8x16x4xf32> to vector<128x4xf32>
    %c0_35 = arith.constant 0 : index
    %c1_36 = arith.constant 1 : index
    %c0_37 = arith.constant 0 : index
    %c0_38 = arith.constant 0 : index
    %43 = vector.load %arg5[%c0_35, %c1_36, %c0_37, %c0_38] : memref<3x3x4x4xf32, #tpu.memory_space<vmem>>, vector<1x1x4x4xf32>
    %44 = vector.shape_cast %43 : vector<1x1x4x4xf32> to vector<4x4xf32>
    %cst_39 = arith.constant dense<0.000000e+00> : vector<128x4xf32>
    %45 = tpu.matmul %42, %44, %cst_39 {dimension_numbers = #tpu.dot_dimension_numbers<[1], [0], [0], [1], [0, 0, 1, 1], [], []>} : vector<128x4xf32>, vector<4x4xf32>, vector<128x4xf32> -> vector<128x4xf32>
    %46 = arith.addf %40, %45 : vector<128x4xf32>
    %47 = vector.extract_strided_slice %12 {offsets = [1, 0, 0], sizes = [8, 16, 4], strides = [1, 1, 1]} : vector<10x16x4xf32> to vector<8x16x4xf32>
    %48 = vector.shape_cast %47 : vector<8x16x4xf32> to vector<128x4xf32>
    %c1_40 = arith.constant 1 : index
    %c1_41 = arith.constant 1 : index
    %c0_42 = arith.constant 0 : index
    %c0_43 = arith.constant 0 : index
    %49 = vector.load %arg5[%c1_40, %c1_41, %c0_42, %c0_43] : memref<3x3x4x4xf32, #tpu.memory_space<vmem>>, vector<1x1x4x4xf32>
    %50 = vector.shape_cast %49 : vector<1x1x4x4xf32> to vector<4x4xf32>
    %cst_44 = arith.constant dense<0.000000e+00> : vector<128x4xf32>
    %51 = tpu.matmul %48, %50, %cst_44 {dimension_numbers = #tpu.dot_dimension_numbers<[1], [0], [0], [1], [0, 0, 1, 1], [], []>} : vector<128x4xf32>, vector<4x4xf32>, vector<128x4xf32> -> vector<128x4xf32>
    %52 = arith.addf %46, %51 : vector<128x4xf32>
    %53 = vector.extract_strided_slice %12 {offsets = [2, 0, 0], sizes = [8, 16, 4], strides = [1, 1, 1]} : vector<10x16x4xf32> to vector<8x16x4xf32>
    %54 = vector.shape_cast %53 : vector<8x16x4xf32> to vector<128x4xf32>
    %c2_45 = arith.constant 2 : index
    %c1_46 = arith.constant 1 : index
    %c0_47 = arith.constant 0 : index
    %c0_48 = arith.constant 0 : index
    %55 = vector.load %arg5[%c2_45, %c1_46, %c0_47, %c0_48] : memref<3x3x4x4xf32, #tpu.memory_space<vmem>>, vector<1x1x4x4xf32>
    %56 = vector.shape_cast %55 : vector<1x1x4x4xf32> to vector<4x4xf32>
    %cst_49 = arith.constant dense<0.000000e+00> : vector<128x4xf32>
    %57 = tpu.matmul %54, %56, %cst_49 {dimension_numbers = #tpu.dot_dimension_numbers<[1], [0], [0], [1], [0, 0, 1, 1], [], []>} : vector<128x4xf32>, vector<4x4xf32>, vector<128x4xf32> -> vector<128x4xf32>
    %58 = arith.addf %52, %57 : vector<128x4xf32>
    %c15_i32_50 = arith.constant 15 : i32
    %59 = tpu.dynamic_rotate %12 by %c15_i32_50 dim 1 : vector<10x16x4xf32>, i32 -> vector<10x16x4xf32>
    %60 = arith.mulf %59, %21 : vector<10x16x4xf32>
    %61 = vector.extract_strided_slice %60 {offsets = [0, 0, 0], sizes = [8, 16, 4], strides = [1, 1, 1]} : vector<10x16x4xf32> to vector<8x16x4xf32>
    %62 = vector.shape_cast %61 : vector<8x16x4xf32> to vector<128x4xf32>
    %c0_51 = arith.constant 0 : index
    %c2_52 = arith.constant 2 : index
    %c0_53 = arith.constant 0 : index
    %c0_54 = arith.constant 0 : index
    %63 = vector.load %arg5[%c0_51, %c2_52, %c0_53, %c0_54] : memref<3x3x4x4xf32, #tpu.memory_space<vmem>>, vector<1x1x4x4xf32>
    %64 = vector.shape_cast %63 : vector<1x1x4x4xf32> to vector<4x4xf32>
    %cst_55 = arith.constant dense<0.000000e+00> : vector<128x4xf32>
    %65 = tpu.matmul %62, %64, %cst_55 {dimension_numbers = #tpu.dot_dimension_numbers<[1], [0], [0], [1], [0, 0, 1, 1], [], []>} : vector<128x4xf32>, vector<4x4xf32>, vector<128x4xf32> -> vector<128x4xf32>
    %66 = arith.addf %58, %65 : vector<128x4xf32>
    %67 = vector.extract_strided_slice %60 {offsets = [1, 0, 0], sizes = [8, 16, 4], strides = [1, 1, 1]} : vector<10x16x4xf32> to vector<8x16x4xf32>
    %68 = vector.shape_cast %67 : vector<8x16x4xf32> to vector<128x4xf32>
    %c1_56 = arith.constant 1 : index
    %c2_57 = arith.constant 2 : index
    %c0_58 = arith.constant 0 : index
    %c0_59 = arith.constant 0 : index
    %69 = vector.load %arg5[%c1_56, %c2_57, %c0_58, %c0_59] : memref<3x3x4x4xf32, #tpu.memory_space<vmem>>, vector<1x1x4x4xf32>
    %70 = vector.shape_cast %69 : vector<1x1x4x4xf32> to vector<4x4xf32>
    %cst_60 = arith.constant dense<0.000000e+00> : vector<128x4xf32>
    %71 = tpu.matmul %68, %70, %cst_60 {dimension_numbers = #tpu.dot_dimension_numbers<[1], [0], [0], [1], [0, 0, 1, 1], [], []>} : vector<128x4xf32>, vector<4x4xf32>, vector<128x4xf32> -> vector<128x4xf32>
    %72 = arith.addf %66, %71 : vector<128x4xf32>
    %73 = vector.extract_strided_slice %60 {offsets = [2, 0, 0], sizes = [8, 16, 4], strides = [1, 1, 1]} : vector<10x16x4xf32> to vector<8x16x4xf32>
    %74 = vector.shape_cast %73 : vector<8x16x4xf32> to vector<128x4xf32>
    %c2_61 = arith.constant 2 : index
    %c2_62 = arith.constant 2 : index
    %c0_63 = arith.constant 0 : index
    %c0_64 = arith.constant 0 : index
    %75 = vector.load %arg5[%c2_61, %c2_62, %c0_63, %c0_64] : memref<3x3x4x4xf32, #tpu.memory_space<vmem>>, vector<1x1x4x4xf32>
    %76 = vector.shape_cast %75 : vector<1x1x4x4xf32> to vector<4x4xf32>
    %cst_65 = arith.constant dense<0.000000e+00> : vector<128x4xf32>
    %77 = tpu.matmul %74, %76, %cst_65 {dimension_numbers = #tpu.dot_dimension_numbers<[1], [0], [0], [1], [0, 0, 1, 1], [], []>} : vector<128x4xf32>, vector<4x4xf32>, vector<128x4xf32> -> vector<128x4xf32>
    %78 = arith.addf %72, %77 : vector<128x4xf32>
    %c0_66 = arith.constant 0 : index
    %c0_67 = arith.constant 0 : index
    %c0_68 = arith.constant 0 : index
    %c0_69 = arith.constant 0 : index
    %79 = vector.load %arg2[%c0_66, %c0_67, %c0_68, %c0_69] : memref<1x8x16x4xf32, #tpu.memory_space<vmem>>, vector<1x8x16x4xf32>
    %80 = vector.shape_cast %79 : vector<1x8x16x4xf32> to vector<8x16x4xf32>
    %c0_70 = arith.constant 0 : index
    %c0_71 = arith.constant 0 : index
    %81 = vector.load %arg6[%c0_70, %c0_71] : memref<1x4xf32, #tpu.memory_space<vmem>>, vector<1x4xf32>
    %82 = vector.broadcast %81 : vector<1x4xf32> to vector<128x4xf32>
    %83 = arith.addf %78, %82 : vector<128x4xf32>
    %84 = vector.shape_cast %83 : vector<128x4xf32> to vector<8x16x4xf32>
    %85 = arith.addf %80, %84 : vector<8x16x4xf32>
    %c0_72 = arith.constant 0 : index
    %c0_73 = arith.constant 0 : index
    %c0_74 = arith.constant 0 : index
    %c0_75 = arith.constant 0 : index
    %86 = vector.load %arg7[%c0_72, %c0_73, %c0_74, %c0_75] : memref<1x8x16x4xf32, #tpu.memory_space<vmem>>, vector<1x8x16x4xf32>
    %87 = vector.shape_cast %86 : vector<1x8x16x4xf32> to vector<8x16x4xf32>
    %88 = vector.shape_cast %85 : vector<8x16x4xf32> to vector<1x8x16x4xf32>
    tpu.vector_store %arg7[%c0_72, %c0_73, %c0_74, %c0_75], %88 {strides = array<i32>} : memref<1x8x16x4xf32, #tpu.memory_space<vmem>>, vector<1x8x16x4xf32>,
    return
  }
  func.func @transform_0(%arg0: i32, %arg1: i32) -> (i32, i32, i32, i32) {
    %c0_i32 = arith.constant 0 : i32
    %c0_i32_0 = arith.constant 0 : i32
    %c0_i32_1 = arith.constant 0 : i32
    return %arg0, %arg1, %c0_i32, %c0_i32_0 : i32, i32, i32, i32
  }
  func.func @transform_1(%arg0: i32, %arg1: i32) -> (i32, i32, i32, i32) {
    %c0_i32 = arith.constant 0 : i32
    %c0_i32_0 = arith.constant 0 : i32
    %c0_i32_1 = arith.constant 0 : i32
    return %arg0, %arg1, %c0_i32, %c0_i32_0 : i32, i32, i32, i32
  }
  func.func @transform_2(%arg0: i32, %arg1: i32) -> (i32, i32, i32, i32, i32) {
    %c0_i32 = arith.constant 0 : i32
    %c0_i32_0 = arith.constant 0 : i32
    %c0_i32_1 = arith.constant 0 : i32
    %c0_i32_2 = arith.constant 0 : i32
    return %arg0, %arg1, %c0_i32, %c0_i32_0, %c0_i32_1 : i32, i32, i32, i32, i32
  }
  func.func @transform_3(%arg0: i32, %arg1: i32) -> (i32, i32, i32, i32) {
    %c0_i32 = arith.constant 0 : i32
    %c0_i32_0 = arith.constant 0 : i32
    %c0_i32_1 = arith.constant 0 : i32
    %c0_i32_2 = arith.constant 0 : i32
    %c0_i32_3 = arith.constant 0 : i32
    return %c0_i32, %c0_i32_0, %c0_i32_1, %c0_i32_2 : i32, i32, i32, i32
  }
  func.func @transform_4(%arg0: i32, %arg1: i32) -> (i32, i32) {
    %c0_i32 = arith.constant 0 : i32
    %c0_i32_0 = arith.constant 0 : i32
    %c0_i32_1 = arith.constant 0 : i32
    return %c0_i32, %c0_i32_0 : i32, i32
  }
  func.func @transform_5(%arg0: i32, %arg1: i32) -> (i32, i32, i32, i32) {
    %c0_i32 = arith.constant 0 : i32
    %c0_i32_0 = arith.constant 0 : i32
    %c0_i32_1 = arith.constant 0 : i32
    return %arg0, %arg1, %c0_i32, %c0_i32_0 : i32, i32, i32, i32
  }
}

</mosaic_0001>

<bundles_post_ra>
// kernel: tpu_custom_call.1
= control target key start
LH: loop header
LB: loop body
LE: loop exit
PB: predicated region body
PF: predicated region fallthrough
CT: control target
= control target key end

     0   :  { %s2006_s18 = smov 0   ;;  %s2008_s19 = smov 0   ;;  %s2795_s0 = inlined_call_operand.vmem [shape: f32[2,16,16,4], index: 0, kind: input, shape index: {}]   ;;  %s2796_s1 = inlined_call_operand.vmem [shape: f32[2,16,16,4], index: 1, kind: input, shape index: {}]   ;;  %s2797_s2 = inlined_call_operand.vmem [shape: f32[2,2,2,16,4], index: 2, kind: input, shape index: {}]   ;;  %s2798_s3 = inlined_call_operand.vmem [shape: f32[3,3,4,4], index: 3, kind: input, shape index: {}]   ;;  %s2799_s4 = inlined_call_operand.vmem [shape: f32[1,4], index: 4, kind: input, shape index: {}]   ;;  %s2800_s5 = inlined_call_operand.vmem [shape: f32[2,16,16,4], index: 5, kind: output, shape index: {}]  }
   0x1   :  { %s2010_s20 = smov 0   ;;  %s2012_s21 = smov 0  }
   0x2   :  { %s2014_s22 = smov 0  }
   0x3 LB: > { %s24_s23 = sadd.s32 1, %s1965_s20  ;;  %s27_s24 = sadd.s32 1, %s1969_s21  ;;  %s1973_s22 = sphi %s2014_s22, %s15_s22   ;;  %s1969_s21 = sphi %s2012_s21, %s2804_s21   ;;  %s1965_s20 = sphi %s2010_s20, %s2803_s20   ;;  %s1961_s19 = sphi %s2008_s19, %s2802_s19   ;;  %s1957_s18 = sphi %s2006_s18, %s2801_s18  }
   0x4   : > { %p25_p0 = scmp.ge.s32.totalorder %s24_s23, 2  ;;  %p1709_p1 = scmp.ge.s32.totalorder %s1973_s22, 1 }
   0x5   : > { %p243_p2 = scmp.lt.s32.totalorder %s1973_s22, 5 }
   0x6   : > { %s2806_s23 = smov (%p25_p0, %s24_s23), 0  ;;  %s2808_s24 = smov (!%p25_p0, %s27_s24), %s1969_s21 }
   0x7   : > { %p244_p3 = pnand %p1709_p1, %p243_p2  ;;  %p29_p4 = scmp.ge.s32.totalorder %s2808_s24, 2 }
   0x8   : > { %s1710_s27 = sshll.u32 (!%p244_p3), %s1957_s18, 3  ;;  %p301_p5 = scmp.lt.s32.totalorder (!%p244_p3), %s1961_s19, 1 }
   0x9   : > { %s2810_s24 = smov (%p29_p4, %s2808_s24), 0  ;;  %247 = sbr.rel (%p244_p3) target bundleno = 463 (0x1cf), region = 40 }
   0xa   : > { %p303_p6 = scmp.lt.s32.totalorder (!%p244_p3), %s1710_s27, 15  ;;  %p324_p7 = scmp.lt.s32.totalorder (!%p244_p3), %s1957_s18, 1 }
   0xe   : > { %v1727_v0 = vld [vmem:[%s2798_s3 + $0xc] sm:$0xf]  ;;  %vm564_vm0 = vcmask 1043456   ;;  %v1762_v1 = vld [vmem:[%s2798_s3 + $0x18] sm:$0xf]  ;;  %s2812_s19 = smov (!%p301_p5, %s1961_s19), 1  ;;  %v437_v10 = vlaneseq }
   0xf   : > { %1890 = vmatpush.msk.msra.mxu1 %vm564_vm0, %v1727_v0  ;;  %1891 = vmatpush.msk.msra.mxu2 %vm564_vm0, %v1727_v0  ;;  %v1780_v2 = vld [vmem:[%s2798_s3 + $0x4] sm:$0xf]  ;;  %v513_v3 = vld [vmem:[%s2798_s3] sm:$0xf]  ;;  %s2814_s27 = smov (!%p303_p6, %s1710_s27), 15  ;;  %s1712_s9 = sshll.u32 %s2812_s19, 5 }
  0x10   : > { %1892 = vmatpush.msk.msra.mxu3 %vm564_vm0, %v1727_v0  ;;  %1728 = vmatpush.msk.msra.mxu0 %vm564_vm0, %v1727_v0  ;;  %s1711_s10 = sshll.u32 %s2814_s27, 1  ;;  %v1798_v4 = vld [vmem:[%s2798_s3 + $0x10] sm:$0xf]  ;;  %vm346_vm1 = vcmask 31744   ;;  %s2816_s18 = smov (!%p324_p7, %s1957_s18), 1  ;;  %v2106_v27 = vshrl.u32 %v437_v10, 7 }
  0x11   : > { %1763 = vmatpush.msk.msrb.mxu2 %vm564_vm0, %v1762_v1  ;;  %1745 = vmatpush.msk.msrb.mxu1 %vm564_vm0, %v513_v3  ;;  %s307_s11 = sadd.s32 %s1712_s9, %s1711_s10  ;;  %s1718_s28 = sshll.u32 %s2816_s18, 2  ;;  %v1975_v55 = vmov 0.0  }
  0x12   : > { %1781 = vmatpush.msk.msrb.mxu3 %vm564_vm0, %v1780_v2  ;;  %s2065_s14 = sshll.u32 %s307_s11, 3  ;;  %1799 = vmatpush.msk.msrb.mxu0 %vm564_vm0, %v1798_v4  ;;  %s1719_s29 = sshll.u32 %s2812_s19, 3  ;;  %vm440_vm2 = vcmp.gt.s32.totalorder %v2106_v27, 0  ;;  %vm472_vm3 = vcmp.lt.s32.totalorder %v2106_v27, 1  ;;  %vm1137_vm4 = vcmp.lt.s32.totalorder %v2106_v27, 7 }
  0x13   : > { %s2072_s17 = scalar_lea.vmem %s2795_s0, %s2065_s14  ;;  %s2078_s27 = scalar_lea.vmem %s2796_s1, %s2065_s14  ;;  %v2151_v56 = vsel %vm440_vm2, 1.0, %v1975_v55 }
  0x14   : > { %v353_v5 = vld [vmem:[%s2072_s17 + $0x20] sm:$0xff]  ;;  %v354_v6 = vld [vmem:[%s2072_s17 + $0x28] sm:$0xff]  ;;  %v355_v30 = vld [vmem:[%s2072_s17 + $0x30] sm:$0xff]  ;;  %s2122_s18 = sadd.s32 %s1719_s29, %s1718_s28  ;;  %s2701_s29 = scalar_lea.vmem %s2800_s5, %s2065_s14 }
  0x15   : > { %v369_v7 = vld [vmem:[%s2078_s27 + $0x20] sm:$0xff]  ;;  %v370_v8 = vld [vmem:[%s2078_s27 + $0x28] sm:$0xff]  ;;  %v356_v31 = vld [vmem:[%s2072_s17 + $0x38] sm:$0xff]  ;;  %s1720_s19 = sshll.u32 %s2122_s18, 3 }
  0x16   : > { %v385_v9 = vmul.f32 %v369_v7, %v353_v5  ;;  %v357_v11 = vld [vmem:[%s2072_s17 + $0x40] sm:$0xff]  ;;  %v358_v12 = vld [vmem:[%s2072_s17 + $0x48] sm:$0xff]  ;;  %v386_v13 = vmul.f32 %v370_v8, %v354_v6  ;;  %v371_v33 = vld [vmem:[%s2078_s27 + $0x30] sm:$0xff]  ;;  %s2165_s7 = scalar_lea.vmem %s2797_s2, %s1720_s19 }
  0x17   : > { %v373_v14 = vld [vmem:[%s2078_s27 + $0x40] sm:$0xff]  ;;  %v374_v15 = vld [vmem:[%s2078_s27 + $0x48] sm:$0xff]  ;;  %v372_v34 = vld [vmem:[%s2078_s27 + $0x38] sm:$0xff]  ;;  %v387_v36 = vmul.f32 %v371_v33, %v355_v30 }
  0x18   : > { %v361_v16 = vld [vmem:[%s2072_s17 + $0x60] sm:$0xff]  ;;  %402 = vst.msk [vmem:[#allocation2 + $0x30] sm:$0xff] %vm346_vm1, %v385_v9  ;;  %v389_v17 = vmul.f32 %v373_v14, %v357_v11  ;;  %v390_v18 = vmul.f32 %v374_v15, %v358_v12  ;;  %v362_v19 = vld [vmem:[%s2072_s17 + $0x68] sm:$0xff]  ;;  %v359_v35 = vld [vmem:[%s2072_s17 + $0x50] sm:$0xff]  ;;  %v388_v40 = vmul.f32 %v372_v34, %v356_v31 }
  0x19   : > { %v377_v20 = vld [vmem:[%s2078_s27 + $0x60] sm:$0xff]  ;;  %v378_v21 = vld [vmem:[%s2078_s27 + $0x68] sm:$0xff]  ;;  %403 = vst.msk [vmem:[#allocation2 + $0x38] sm:$0xff] %vm346_vm1, %v386_v13  ;;  %v360_v37 = vld [vmem:[%s2072_s17 + $0x58] sm:$0xff] }
  0x1a   : > { %v393_v22 = vmul.f32 %v377_v20, %v361_v16  ;;  %v394_v23 = vmul.f32 %v378_v21, %v362_v19  ;;  %v2098_v24 = vld [vmem:[%s2072_s17] sm:$0xff]  ;;  %v2101_v25 = vld [vmem:[%s2072_s17 + $0x8] sm:$0xff]  ;;  %406 = vst.msk [vmem:[#allocation2 + $0x50] sm:$0xff] %vm346_vm1, %v389_v17  ;;  %v375_v38 = vld [vmem:[%s2078_s27 + $0x50] sm:$0xff] }
  0x1b   : > { %v365_v26 = vld [vmem:[%s2078_s27] sm:$0xff]  ;;  %v366_v28 = vld [vmem:[%s2078_s27 + $0x8] sm:$0xff]  ;;  %407 = vst.msk [vmem:[#allocation2 + $0x58] sm:$0xff] %vm346_vm1, %v390_v18  ;;  %v376_v39 = vld [vmem:[%s2078_s27 + $0x58] sm:$0xff]  ;;  %v391_v43 = vmul.f32 %v375_v38, %v359_v35 }
  0x1c   : > { %v381_v29 = vmul.f32 %v365_v26, %v2098_v24  ;;  %v382_v32 = vmul.f32 %v366_v28, %v2101_v25  ;;  %410 = vst.msk [vmem:[#allocation2 + $0x70] sm:$0xff] %vm346_vm1, %v393_v22  ;;  %v363_v41 = vld [vmem:[%s2072_s17 + $0x70] sm:$0xff]  ;;  %v364_v44 = vld [vmem:[%s2072_s17 + $0x78] sm:$0xff]  ;;  %v392_v47 = vmul.f32 %v376_v39, %v360_v37  ;;  %v342_v9 = vld [vmem:[%s2165_s7] sm:$0xff] }
  0x1d   : > { %411 = vst.msk [vmem:[#allocation2 + $0x78] sm:$0xff] %vm346_vm1, %v394_v23  ;;  %v379_v42 = vld [vmem:[%s2078_s27 + $0x70] sm:$0xff]  ;;  %v380_v45 = vld [vmem:[%s2078_s27 + $0x78] sm:$0xff]  ;;  %v343_v13 = vld [vmem:[%s2165_s7 + $0x8] sm:$0xff] }
  0x1e   : > { %398 = vst.msk [vmem:[#allocation2 + $0x10] sm:$0xff] %vm346_vm1, %v381_v29  ;;  %v2135_v48 = vld [vmem:[%s2072_s17 + $0x10] sm:$0xff]  ;;  %v395_v52 = vmul.f32 %v379_v42, %v363_v41  ;;  %v2145_v53 = vld [vmem:[%s2072_s17 + $0x18] sm:$0xff]  ;;  %v396_v59 = vmul.f32 %v380_v45, %v364_v44  ;;  %v1834_v19 = vld [vmem:[%s2798_s3 + $0x8] sm:$0xf] }
  0x1f   : > { %v2131_v46 = vld [vmem:[#allocation2 + $0x30] sm:$0xff]  ;;  %399 = vst.msk [vmem:[#allocation2 + $0x18] sm:$0xff] %vm346_vm1, %v382_v32  ;;  %v368_v54 = vld [vmem:[%s2078_s27 + $0x18] sm:$0xff] }
  0x20   : > { %v367_v49 = vld [vmem:[%s2078_s27 + $0x10] sm:$0xff]  ;;  %v2139_v50 = vld [vmem:[#allocation2 + $0x38] sm:$0xff]  ;;  %v455_v51 = vrot.slane %v2131_v46, 7  ;;  %404 = vst.msk [vmem:[#allocation2 + $0x40] sm:$0xff] %vm346_vm1, %v387_v36  ;;  %v384_v2 = vmul.f32 %v368_v54, %v2145_v53 }
  0x21   : > { %v465_v57 = vrot.slane %v2139_v50, 7  ;;  %v2154_v58 = vld [vmem:[#allocation2 + $0x50] sm:$0xff]  ;;  %405 = vst.msk [vmem:[#allocation2 + $0x48] sm:$0xff] %vm346_vm1, %v388_v40  ;;  %v383_v62 = vmul.f32 %v367_v49, %v2135_v48  ;;  %v1816_v28 = vld [vmem:[%s2798_s3 + $0x1c] sm:$0xf] }
  0x22   : > { %v2157_v60 = vld [vmem:[#allocation2 + $0x58] sm:$0xff]  ;;  %v457_v61 = vrot.slane %v2154_v58, 7  ;;  %408 = vst.msk [vmem:[#allocation2 + $0x60] sm:$0xff] %vm346_vm1, %v391_v43  ;;  %v1852_v26 = vld [vmem:[%s2798_s3 + $0x14] sm:$0xf] }
  0x23   : > { %v486_v63 = vsel %vm472_vm3, %v465_v57, %v455_v51  ;;  %v467_v0 = vrot.slane %v2157_v60, 7  ;;  %v2170_v1 = vld [vmem:[#allocation2 + $0x70] sm:$0xff]  ;;  %409 = vst.msk [vmem:[#allocation2 + $0x68] sm:$0xff] %vm346_vm1, %v392_v47  ;;  %v2236_v29 = vsel %vm472_vm3, %v455_v51, %v465_v57  ;;  %v1870_v51 = vld [vmem:[%s2798_s3 + $0x20] sm:$0xf] }
  0x24   : > { %v2175_v3 = vmul.f32 %v2151_v56, %v486_v63  ;;  %v2177_v4 = vld [vmem:[#allocation2 + $0x78] sm:$0xff]  ;;  %v459_v5 = vrot.slane %v2170_v1, 7  ;;  %412 = vst.msk [vmem:[#allocation2 + $0x80] sm:$0xff] %vm346_vm1, %v395_v52 }
  0x25   : > { %v488_v6 = vsel %vm472_vm3, %v467_v0, %v457_v61  ;;  %v469_v7 = vrot.slane %v2177_v4, 7  ;;  %v2184_v8 = vld [vmem:[#allocation2 + $0x10] sm:$0xff]  ;;  %413 = vst.msk [vmem:[#allocation2 + $0x88] sm:$0xff] %vm346_vm1, %v396_v59  ;;  %v2250_v34 = vsel %vm472_vm3, %v457_v61, %v467_v0 }
  0x26   : > { %1733 = vmatmul.msk.f32.vlgmr.msra.gmra.mxu1 %vm346_vm1, %v2175_v3  ;;  %v2191_v10 = vmul.f32 %v2151_v56, %v488_v6  ;;  %v2193_v11 = vld [vmem:[#allocation2 + $0x18] sm:$0xff]  ;;  %v453_v12 = vrot.slane %v2184_v8, 7  ;;  %400 = vst.msk [vmem:[#allocation2 + $0x20] sm:$0xff] %vm346_vm1, %v383_v62 }
  0x27   : > { %v490_v14 = vsel %vm472_vm3, %v469_v7, %v459_v5  ;;  %v463_v15 = vrot.slane %v2193_v11, 7  ;;  %401 = vst.msk [vmem:[#allocation2 + $0x28] sm:$0xff] %vm346_vm1, %v384_v2  ;;  %v2207_v17 = vld [vmem:[#allocation2 + $0x40] sm:$0xff]  ;;  %1817 = vmatpush.msk.msra.mxu1 %vm564_vm0, %v1816_v28  ;;  %v2262_v39 = vsel %vm472_vm3, %v459_v5, %v469_v7 }
  0x28   : > { %1737 = vmatmul.msk.f32.vlgmr.msra.gmra.mxu2 %vm346_vm1, %v2191_v10  ;;  %v2205_v16 = vmul.f32 %v2151_v56, %v490_v14  ;;  %v2209_v18 = vld [vmem:[#allocation2 + $0x48] sm:$0xff]  ;;  %347 = vst.msk [vmem:[#allocation2] sm:$0xff] %vm346_vm1, %v342_v9  ;;  %v456_v30 = vrot.slane %v2207_v17, 7 }
  0x29   : > { %v484_v20 = vsel %vm472_vm3, %v463_v15, %v453_v12  ;;  %v2217_v21 = vld [vmem:[#allocation2 + $0x60] sm:$0xff]  ;;  %348 = vst.msk [vmem:[#allocation2 + $0x8] sm:$0xff] %vm346_vm1, %v343_v13  ;;  %1835 = vmatpush.msk.msra.mxu2 %vm564_vm0, %v1834_v19  ;;  %v466_v31 = vrot.slane %v2209_v18, 7  ;;  %v474_v44 = vsel %vm472_vm3, %v453_v12, %v463_v15  ;;  %v345_v15 = vld [vmem:[%s2165_s7 + $0x18] sm:$0xff] }
  0x2a   : > { %1741 = vmatmul.msk.f32.vlgmr.msra.gmra.mxu3 %vm346_vm1, %v2205_v16  ;;  %v2224_v22 = vmul.f32 %v2151_v56, %v484_v20  ;;  %v2226_v23 = vld [vmem:[#allocation2 + $0x68] sm:$0xff]  ;;  %v458_v35 = vrot.slane %v2217_v21, 7  ;;  %416 = vst.msk [vmem:[#allocation2 + $0x98] sm:$0xff] %vm346_vm1, %v345_v15 }
  0x2b   : > { %1853 = vmatpush.msk.msra.mxu3 %vm564_vm0, %v1852_v26  ;;  %v2244_v32 = vld [vmem:[#allocation2 + $0x80] sm:$0xff]  ;;  %v468_v36 = vrot.slane %v2226_v23, 7  ;;  %v487_v40 = vsel %vm472_vm3, %v466_v31, %v456_v30  ;;  %v477_v0 = vsel %vm472_vm3, %v456_v30, %v466_v31 }
  0x2c   : > { %1729 = vmatmul.msk.f32.vlgmr.msra.gmra.mxu0 %vm346_vm1, %v2224_v22  ;;  %v2246_v33 = vld [vmem:[#allocation2 + $0x88] sm:$0xff]  ;;  %v460_v41 = vrot.slane %v2244_v32, 7  ;;  %v501_v49 = vmul.f32 %v2151_v56, %v487_v40 }
  0x2d   : > { %v2256_v37 = vld [vmem:[#allocation2 + $0x20] sm:$0xff]  ;;  %v470_v42 = vrot.slane %v2246_v33, 7  ;;  %v489_v43 = vsel %vm472_vm3, %v468_v36, %v458_v35  ;;  %1871 = vmatpush.msk.msra.mxu0 %vm564_vm0, %v1870_v51  ;;  %v2311_v6 = vsel %vm472_vm3, %v458_v35, %v468_v36 }
  0x2e   : > { %1734 = vmatmul.msk.f32.gmra.mxu1 %vm346_vm1, %v2236_v29  ;;  %v2258_v38 = vld [vmem:[#allocation2 + $0x28] sm:$0xff]  ;;  %v454_v45 = vrot.slane %v2256_v37, 7  ;;  %v2286_v54 = vmul.f32 %v2151_v56, %v489_v43 }
  0x2f   : > { %v464_v47 = vrot.slane %v2258_v38, 7  ;;  %v491_v52 = vsel %vm472_vm3, %v470_v42, %v460_v41  ;;  %v2298_v62 = vld [vmem:[#allocation2] sm:$0xff]  ;;  %v2316_v7 = vsel %vm472_vm3, %v460_v41, %v470_v42 }
  0x30   : > { %1738 = vmatmul.msk.f32.gmra.mxu2 %vm346_vm1, %v2250_v34  ;;  %v2293_v59 = vmul.f32 %v2151_v56, %v491_v52  ;;  %v2300_v63 = vld [vmem:[#allocation2 + $0x8] sm:$0xff]  ;;  %v452_v2 = vrot.slane %v2298_v62, 7  ;;  %v439_v52 = vadd.s32 8, %v2106_v27 }
  0x31   : > { %v485_v57 = vsel %vm472_vm3, %v464_v47, %v454_v45  ;;  %v462_v5 = vrot.slane %v2300_v63, 7  ;;  %v475_v12 = vsel %vm472_vm3, %v454_v45, %v464_v47  ;;  %v1127_v51 = vrot.slane %v2300_v63, 1 }
  0x32   : > { %1742 = vmatmul.msk.f32.gmra.mxu3 %vm346_vm1, %v2262_v39  ;;  %v497_v61 = vmul.f32 %v2151_v56, %v485_v57  ;;  %vm447_vm5 = vcmp.lt.s32.totalorder %v439_v52, 15 }
  0x33   : > { %v483_v9 = vsel %vm472_vm3, %v462_v5, %v452_v2  ;;  %v473_v14 = vsel %vm472_vm3, %v452_v2, %v462_v5  ;;  %v2504_v2 = vsel %vm447_vm5, 1.0, %v1975_v55 }
  0x34   : > { %1730 = vmatmul.msk.f32.gmra.mxu0 %vm346_vm1, %v474_v44  ;;  %v493_v13 = vmul.f32 %v2151_v56, %v483_v9 }
  0x36   : > { %1735 = vmatmul.msk.f32.gmra.mxu1 %vm346_vm1, %v501_v49 }
  0x38   : > { %1739 = vmatmul.msk.f32.gmra.mxu2 %vm346_vm1, %v2286_v54 }
  0x3a   : > { %1743 = vmatmul.msk.f32.gmra.mxu3 %vm346_vm1, %v2293_v59 }
  0x3c   : > { %1731 = vmatmul.msk.f32.gmra.mxu0 %vm346_vm1, %v497_v61 }
  0x3e   : > { %1736 = vmatmul.msk.f32.gmra.mxu1 %vm346_vm1, %v477_v0 }
  0x40   : > { %1740 = vmatmul.msk.f32.gmra.mxu2 %vm346_vm1, %v2311_v6 }
  0x42   : > { %1744 = vmatmul.msk.f32.gmra.mxu3 %vm346_vm1, %v2316_v7 }
  0x44   : > { %1732 = vmatmul.msk.f32.gmra.mxu0 %vm346_vm1, %v475_v12 }
  0x46   : > { %1746 = vmatmul.msk.f32.vlgmr.msrb.gmra.mxu1 %vm346_vm1, %v493_v13 }
  0x48   : > { %1764 = vmatmul.msk.f32.vlgmr.msrb.gmra.mxu2 %vm346_vm1, %v497_v61 }
  0x4a   : > { %1782 = vmatmul.msk.f32.vlgmr.msrb.gmra.mxu3 %vm346_vm1, %v2298_v62 }
  0x4c   : > { %1800 = vmatmul.msk.f32.vlgmr.msrb.gmra.mxu0 %vm346_vm1, %v2184_v8 }
  0x4e   : > { %1747 = vmatmul.msk.f32.gmra.mxu1 %vm346_vm1, %v473_v14 }
  0x50   : > { %1765 = vmatmul.msk.f32.gmra.mxu2 %vm346_vm1, %v475_v12 }
  0x52   : > { %1783 = vmatmul.msk.f32.gmra.mxu3 %vm346_vm1, %v2300_v63  ;;  %v1119_v63 = vrot.slane %v2256_v37, 1 }
  0x54   : > { %1801 = vmatmul.msk.f32.gmra.mxu0 %vm346_vm1, %v2193_v11 }
  0x56   : > { %1748 = vmatmul.msk.f32.gmra.mxu1 %vm346_vm1, %v2224_v22  ;;  %v2429_v22 = vld [vmem:[#allocation2 + $0x98] sm:$0xff] }
  0x57   : > { %v471_v31 = vrot.slane %v2429_v22, 7 }
  0x58   : > { %1766 = vmatmul.msk.f32.gmra.mxu2 %vm346_vm1, %v2175_v3 }
  0x5a   : > { %1784 = vmatmul.msk.f32.gmra.mxu3 %vm346_vm1, %v2184_v8 }
  0x5c   : > { %1802 = vmatmul.msk.f32.gmra.mxu0 %vm346_vm1, %v2256_v37 }
  0x5e   : > { %1749 = vmatmul.msk.f32.gmra.mxu1 %vm346_vm1, %v474_v44 }
  0x60   : > { %1767 = vmatmul.msk.f32.gmra.mxu2 %vm346_vm1, %v2236_v29 }
  0x62   : > { %1785 = vmatmul.msk.f32.gmra.mxu3 %vm346_vm1, %v2193_v11 }
  0x64   : > { %1803 = vmatmul.msk.f32.gmra.mxu0 %vm346_vm1, %v2258_v38 }
  0x66   : > { %1750 = vmatmul.msk.f32.gmra.mxu1 %vm346_vm1, %v497_v61 }
  0x68   : > { %1768 = vmatmul.msk.f32.gmra.mxu2 %vm346_vm1, %v501_v49 }
  0x6a   : > { %1786 = vmatmul.msk.f32.gmra.mxu3 %vm346_vm1, %v2256_v37 }
  0x6c   : > { %1804 = vmatmul.msk.f32.gmra.mxu0 %vm346_vm1, %v2131_v46 }
  0x6e   : > { %1751 = vmatmul.msk.f32.gmra.mxu1 %vm346_vm1, %v475_v12 }
  0x70   : > { %1769 = vmatmul.msk.f32.gmra.mxu2 %vm346_vm1, %v477_v0 }
  0x72   : > { %1787 = vmatmul.msk.f32.gmra.mxu3 %vm346_vm1, %v2258_v38 }
  0x74   : > { %1805 = vmatmul.msk.f32.gmra.mxu0 %vm346_vm1, %v2139_v50 }
  0x76   : > { %1752 = vmatmul.msk.f32.gmra.mxu1 %vm346_vm1, %v2175_v3  ;;  %v344_v3 = vld [vmem:[%s2165_s7 + $0x10] sm:$0xff] }
  0x77   : > { %415 = vst.msk [vmem:[#allocation2 + $0x90] sm:$0xff] %vm346_vm1, %v344_v3 }
  0x78   : > { %1770 = vmatmul.msk.f32.gmra.mxu2 %vm346_vm1, %v2191_v10 }
  0x7a   : > { %1788 = vmatmul.msk.f32.gmra.mxu3 %vm346_vm1, %v2131_v46 }
  0x7c   : > { %1806 = vmatmul.msk.f32.gmra.mxu0 %vm346_vm1, %v2207_v17 }
  0x7e   : > { %1753 = vmatmul.msk.f32.gmra.mxu1 %vm346_vm1, %v2236_v29  ;;  %v2427_v20 = vld [vmem:[#allocation2 + $0x90] sm:$0xff] }
  0x7f   : > { %v461_v30 = vrot.slane %v2427_v20, 7 }
  0x80   : > { %1771 = vmatmul.msk.f32.gmra.mxu2 %vm346_vm1, %v2250_v34 }
  0x81   : > { %v492_v35 = vsel %vm472_vm3, %v471_v31, %v461_v30  ;;  %v482_v47 = vsel %vm472_vm3, %v461_v30, %v471_v31 }
  0x82   : > { %1789 = vmatmul.msk.f32.gmra.mxu3 %vm346_vm1, %v2139_v50  ;;  %v511_v41 = vmul.f32 %v2151_v56, %v492_v35 }
  0x84   : > { %1807 = vmatmul.msk.f32.gmra.mxu0 %vm346_vm1, %v2209_v18 }
  0x86   : > { %1754 = vmatmul.msk.f32.gmra.mxu1 %vm346_vm1, %v501_v49  ;;  %v1117_v49 = vrot.slane %v2298_v62, 1 }
  0x88   : > { %1772 = vmatmul.msk.f32.gmra.mxu2 %vm346_vm1, %v2286_v54  ;;  %v1138_v62 = vsel %vm1137_vm4, %v1117_v49, %v1127_v51  ;;  %v1148_v5 = vsel %vm1137_vm4, %v1127_v51, %v1117_v49 }
  0x89   : > { %v1159_v14 = vmul.f32 %v2504_v2, %v1148_v5 }
  0x8a   : > { %1790 = vmatmul.msk.f32.gmra.mxu3 %vm346_vm1, %v2207_v17 }
  0x8c   : > { %1808 = vmatmul.msk.f32.gmra.mxu0 %vm346_vm1, %v2154_v58 }
  0x8e   : > { %1755 = vmatmul.msk.f32.gmra.mxu1 %vm346_vm1, %v477_v0  ;;  %v1129_v0 = vrot.slane %v2258_v38, 1 }
  0x90   : > { %1773 = vmatmul.msk.f32.gmra.mxu2 %vm346_vm1, %v2311_v6  ;;  %v1150_v3 = vsel %vm1137_vm4, %v1129_v0, %v1119_v63 }
  0x91   : > { %v1163_v31 = vmul.f32 %v2504_v2, %v1150_v3 }
  0x92   : > { %1791 = vmatmul.msk.f32.gmra.mxu3 %vm346_vm1, %v2209_v18 }
  0x94   : > { %1809 = vmatmul.msk.f32.gmra.mxu0 %vm346_vm1, %v2157_v60 }
  0x96   : > { %1756 = vmatmul.msk.f32.gmra.mxu1 %vm346_vm1, %v2191_v10 }
  0x98   : > { %1774 = vmatmul.msk.f32.gmra.mxu2 %vm346_vm1, %v2205_v16 }
  0x9a   : > { %1792 = vmatmul.msk.f32.gmra.mxu3 %vm346_vm1, %v2154_v58 }
  0x9c   : > { %1810 = vmatmul.msk.f32.gmra.mxu0 %vm346_vm1, %v2217_v21 }
  0x9e   : > { %1757 = vmatmul.msk.f32.gmra.mxu1 %vm346_vm1, %v2250_v34 }
  0xa0   : > { %1775 = vmatmul.msk.f32.gmra.mxu2 %vm346_vm1, %v2262_v39 }
  0xa2   : > { %1793 = vmatmul.msk.f32.gmra.mxu3 %vm346_vm1, %v2157_v60 }
  0xa3   : > { %v2417_v19 = vpop.f32.mrf.mxu1 }
  0xa4   : > { %1811 = vmatmul.msk.f32.gmra.mxu0 %vm346_vm1, %v2226_v23 }
  0xa6   : > { %1758 = vmatmul.msk.f32.gmra.mxu1 %vm346_vm1, %v2286_v54 }
  0xa8   : > { %1776 = vmatmul.msk.f32.gmra.mxu2 %vm346_vm1, %v2293_v59  ;;  %v1128_v59 = vrot.slane %v2193_v11, 1 }
  0xa9   : > { %v585_v10 = vpop.f32.mrf.mxu0 }
  0xaa   : > { %1794 = vmatmul.msk.f32.gmra.mxu3 %vm346_vm1, %v2217_v21 }
  0xab   : > { %v2431_v26 = vpop.f32.mrf.mxu2  ;;  %v2433_v28 = vpop.f32.mrf.mxu1 }
  0xac   : > { %1812 = vmatmul.msk.f32.gmra.mxu0 %vm346_vm1, %v2170_v1 }
  0xad   : > { %v2437_v29 = vpop.f32.mrf.mxu3 }
  0xae   : > { %1759 = vmatmul.msk.f32.gmra.mxu1 %vm346_vm1, %v2311_v6  ;;  %v1140_v6 = vsel %vm1137_vm4, %v1119_v63, %v1129_v0 }
  0xb0   : > { %1777 = vmatmul.msk.f32.gmra.mxu2 %vm346_vm1, %v2316_v7 }
  0xb1   : > { %v588_v34 = vpop.f32.mrf.mxu0 }
  0xb2   : > { %1795 = vmatmul.msk.f32.gmra.mxu3 %vm346_vm1, %v2226_v23 }
  0xb3   : > { %v2449_v36 = vpop.f32.mrf.mxu2  ;;  %v2451_v40 = vpop.f32.mrf.mxu1 }
  0xb4   : > { %1813 = vmatmul.msk.f32.gmra.mxu0 %vm346_vm1, %v2177_v4 }
  0xb5   : > { %v2456_v42 = vpop.f32.mrf.mxu3 }
  0xb6   : > { %1760 = vmatmul.msk.f32.gmra.mxu1 %vm346_vm1, %v2205_v16 }
  0xb8   : > { %1778 = vmatmul.msk.f32.gmra.mxu2 %vm346_vm1, %v511_v41 }
  0xb9   : > { %v2461_v43 = vpop.f32.mrf.mxu0 }
  0xba   : > { %1796 = vmatmul.msk.f32.gmra.mxu3 %vm346_vm1, %v2170_v1 }
  0xbb   : > { %v2465_v44 = vpop.f32.mrf.mxu2  ;;  %v2467_v45 = vpop.f32.mrf.mxu1 }
  0xbc   : > { %1814 = vmatmul.msk.f32.gmra.mxu0 %vm346_vm1, %v2244_v32 }
  0xbd   : > { %v2471_v56 = vpop.f32.mrf.mxu3 }
  0xbe   : > { %1761 = vmatmul.msk.f32.gmra.mxu1 %vm346_vm1, %v2262_v39  ;;  %v1118_v39 = vrot.slane %v2184_v8, 1 }
  0xc0   : > { %1779 = vmatmul.msk.f32.gmra.mxu2 %vm346_vm1, %v482_v47  ;;  %v1139_v8 = vsel %vm1137_vm4, %v1118_v39, %v1128_v59  ;;  %v1149_v12 = vsel %vm1137_vm4, %v1128_v59, %v1118_v39 }
  0xc1   : > { %v2478_v16 = vpop.f32.mrf.mxu0 }
  0xc2   : > { %1797 = vmatmul.msk.f32.gmra.mxu3 %vm346_vm1, %v2177_v4 }
  0xc3   : > { %v2486_v54 = vpop.f32.mrf.mxu2  ;;  %v659_v57 = vpop.f32.mrf.mxu1 }
  0xc4   : > { %1815 = vmatmul.msk.f32.gmra.mxu0 %vm346_vm1, %v2246_v33  ;;  %v660_v7 = vadd.f32 %v659_v57, %v585_v10  ;;  %v1161_v10 = vmul.f32 %v2504_v2, %v1149_v12  ;;  %v1130_v57 = vrot.slane %v2139_v50, 1 }
  0xc5   : > { %v2492_v61 = vpop.f32.mrf.mxu3 }
  0xc6   : > { %1818 = vmatmul.msk.f32.vlgmr.msra.gmra.mxu1 %vm346_vm1, %v2256_v37 }
  0xc8   : > { %1836 = vmatmul.msk.f32.vlgmr.msra.gmra.mxu2 %vm346_vm1, %v1138_v62 }
  0xc9   : > { %v961_v11 = vpop.f32.mrf.mxu0 }
  0xca   : > { %1854 = vmatmul.msk.f32.vlgmr.msra.gmra.mxu3 %vm346_vm1, %v1139_v8 }
  0xcb   : > { %v735_v37 = vpop.f32.mrf.mxu2  ;;  %v662_v9 = vpop.f32.mrf.mxu1 }
  0xcc   : > { %v783_v13 = vadd.f32 %v735_v37, %v660_v7  ;;  %1872 = vmatmul.msk.f32.vlgmr.msra.gmra.mxu0 %vm346_vm1, %v1140_v6  ;;  %v663_v41 = vadd.f32 %v662_v9, %v588_v34 }
  0xcd   : > { %v869_v55 = vpop.f32.mrf.mxu3 }
  0xce   : > { %v917_v15 = vadd.f32 %v869_v55, %v783_v13  ;;  %1819 = vmatmul.msk.f32.gmra.mxu1 %vm346_vm1, %v2258_v38  ;;  %v1120_v38 = vrot.slane %v2131_v46, 1 }
  0xd0   : > { %v2520_v30 = vadd.f32 %v961_v11, %v917_v15  ;;  %1837 = vmatmul.msk.f32.gmra.mxu2 %vm346_vm1, %v1159_v14  ;;  %v1141_v62 = vsel %vm1137_vm4, %v1120_v38, %v1130_v57  ;;  %v1121_v15 = vrot.slane %v2207_v17, 1 }
  0xd1   : > { %v964_v35 = vpop.f32.mrf.mxu0 }
  0xd2   : > { %1855 = vmatmul.msk.f32.gmra.mxu3 %vm346_vm1, %v1161_v10 }
  0xd3   : > { %v738_v47 = vpop.f32.mrf.mxu2  ;;  %v665_v49 = vpop.f32.mrf.mxu1 }
  0xd4   : > { %v784_v51 = vadd.f32 %v738_v47, %v663_v41  ;;  %1873 = vmatmul.msk.f32.gmra.mxu0 %vm346_vm1, %v1163_v31  ;;  %v666_v63 = vadd.f32 %v665_v49, %v2461_v43 }
  0xd5   : > { %v872_v52 = vpop.f32.mrf.mxu3 }
  0xd6   : > { %v918_v39 = vadd.f32 %v872_v52, %v784_v51  ;;  %1820 = vmatmul.msk.f32.gmra.mxu1 %vm346_vm1, %v2131_v46  ;;  %v1151_v46 = vsel %vm1137_vm4, %v1130_v57, %v1120_v38 }
  0xd7   : > { %v1165_v43 = vmul.f32 %v2504_v2, %v1151_v46 }
  0xd8   : > { %v2530_v59 = vadd.f32 %v964_v35, %v918_v39  ;;  %1838 = vmatmul.msk.f32.gmra.mxu2 %vm346_vm1, %v1139_v8 }
  0xd9   : > { %v967_v34 = vpop.f32.mrf.mxu0 }
  0xda   : > { %1856 = vmatmul.msk.f32.gmra.mxu3 %vm346_vm1, %v1140_v6 }
  0xdb   : > { %v741_v0 = vpop.f32.mrf.mxu2  ;;  %v668_v11 = vpop.f32.mrf.mxu1 }
  0xdc   : > { %v785_v5 = vadd.f32 %v741_v0, %v666_v63  ;;  %1874 = vmatmul.msk.f32.gmra.mxu0 %vm346_vm1, %v1141_v62  ;;  %v669_v12 = vadd.f32 %v668_v11, %v2478_v16 }
  0xdd   : > { %v875_v7 = vpop.f32.mrf.mxu3 }
  0xde   : > { %v919_v37 = vadd.f32 %v875_v7, %v785_v5  ;;  %1821 = vmatmul.msk.f32.gmra.mxu1 %vm346_vm1, %v2139_v50  ;;  %v1131_v50 = vrot.slane %v2209_v18, 1  ;;  %v1122_v7 = vrot.slane %v2154_v58, 1 }
  0xe0   : > { %v2542_v8 = vadd.f32 %v967_v34, %v919_v37  ;;  %1839 = vmatmul.msk.f32.gmra.mxu2 %vm346_vm1, %v1161_v10  ;;  %v1142_v41 = vsel %vm1137_vm4, %v1121_v15, %v1131_v50 }
  0xe1   : > { %v970_v9 = vpop.f32.mrf.mxu0 }
  0xe2   : > { %1857 = vmatmul.msk.f32.gmra.mxu3 %vm346_vm1, %v1163_v31 }
  0xe3   : > { %v744_v13 = vpop.f32.mrf.mxu2  ;;  %v671_v14 = vpop.f32.mrf.mxu1 }
  0xe4   : > { %v786_v55 = vadd.f32 %v744_v13, %v669_v12  ;;  %1875 = vmatmul.msk.f32.gmra.mxu0 %vm346_vm1, %v1165_v43  ;;  %v672_v47 = vadd.f32 %v671_v14, %v2417_v19 }
  0xe5   : > { %v878_v3 = vpop.f32.mrf.mxu3 }
  0xe6   : > { %v920_v35 = vadd.f32 %v878_v3, %v786_v55  ;;  %1822 = vmatmul.msk.f32.gmra.mxu1 %vm346_vm1, %v2207_v17  ;;  %v1152_v17 = vsel %vm1137_vm4, %v1131_v50, %v1121_v15 }
  0xe7   : > { %v1167_v19 = vmul.f32 %v2504_v2, %v1152_v17 }
  0xe8   : > { %v2553_v10 = vadd.f32 %v970_v9, %v920_v35  ;;  %1840 = vmatmul.msk.f32.gmra.mxu2 %vm346_vm1, %v1140_v6 }
  0xe9   : > { %v973_v16 = vpop.f32.mrf.mxu0 }
  0xea   : > { %1858 = vmatmul.msk.f32.gmra.mxu3 %vm346_vm1, %v1141_v62 }
  0xeb   : > { %v747_v49 = vpop.f32.mrf.mxu2  ;;  %v674_v51 = vpop.f32.mrf.mxu1 }
  0xec   : > { %v787_v52 = vadd.f32 %v747_v49, %v672_v47  ;;  %1876 = vmatmul.msk.f32.gmra.mxu0 %vm346_vm1, %v1142_v41  ;;  %v675_v34 = vadd.f32 %v674_v51, %v2433_v28  ;;  %v1123_v51 = vrot.slane %v2217_v21, 1 }
  0xed   : > { %v881_v38 = vpop.f32.mrf.mxu3 }
  0xee   : > { %v921_v57 = vadd.f32 %v881_v38, %v787_v52  ;;  %1823 = vmatmul.msk.f32.gmra.mxu1 %vm346_vm1, %v2209_v18  ;;  %v1132_v18 = vrot.slane %v2157_v60, 1 }
  0xf0   : > { %v2565_v6 = vadd.f32 %v973_v16, %v921_v57  ;;  %1841 = vmatmul.msk.f32.gmra.mxu2 %vm346_vm1, %v1163_v31  ;;  %v1143_v37 = vsel %vm1137_vm4, %v1122_v7, %v1132_v18 }
  0xf1   : > { %v976_v39 = vpop.f32.mrf.mxu0 }
  0xf2   : > { %1859 = vmatmul.msk.f32.gmra.mxu3 %vm346_vm1, %v1165_v43 }
  0xf3   : > { %v750_v63 = vpop.f32.mrf.mxu2  ;;  %v677_v0 = vpop.f32.mrf.mxu1 }
  0xf4   : > { %v788_v11 = vadd.f32 %v750_v63, %v675_v34  ;;  %1877 = vmatmul.msk.f32.gmra.mxu0 %vm346_vm1, %v1167_v19  ;;  %v678_v9 = vadd.f32 %v677_v0, %v2451_v40 }
  0xf5   : > { %v884_v5 = vpop.f32.mrf.mxu3 }
  0xf6   : > { %v922_v46 = vadd.f32 %v884_v5, %v788_v11  ;;  %1824 = vmatmul.msk.f32.gmra.mxu1 %vm346_vm1, %v2154_v58  ;;  %v1153_v58 = vsel %vm1137_vm4, %v1132_v18, %v1122_v7 }
  0xf7   : > { %v1169_v40 = vmul.f32 %v2504_v2, %v1153_v58 }
  0xf8   : > { %v2576_v31 = vadd.f32 %v976_v39, %v922_v46  ;;  %1842 = vmatmul.msk.f32.gmra.mxu2 %vm346_vm1, %v1141_v62 }
  0xf9   : > { %v979_v28 = vpop.f32.mrf.mxu0 }
  0xfa   : > { %1860 = vmatmul.msk.f32.gmra.mxu3 %vm346_vm1, %v1142_v41 }
  0xfb   : > { %v753_v12 = vpop.f32.mrf.mxu2  ;;  %v680_v13 = vpop.f32.mrf.mxu1 }
  0xfc   : > { %v789_v14 = vadd.f32 %v753_v12, %v678_v9  ;;  %1878 = vmatmul.msk.f32.gmra.mxu0 %vm346_vm1, %v1143_v37  ;;  %v681_v50 = vadd.f32 %v680_v13, %v2467_v45  ;;  %v1124_v9 = vrot.slane %v2170_v1, 1 }
  0xfd   : > { %v887_v55 = vpop.f32.mrf.mxu3 }
  0xfe   : > { %v923_v3 = vadd.f32 %v887_v55, %v789_v14  ;;  %1825 = vmatmul.msk.f32.gmra.mxu1 %vm346_vm1, %v2157_v60  ;;  %v1133_v60 = vrot.slane %v2226_v23, 1 }
 0x100   : > { %v2588_v62 = vadd.f32 %v979_v28, %v923_v3  ;;  %1843 = vmatmul.msk.f32.gmra.mxu2 %vm346_vm1, %v1165_v43  ;;  %v1144_v38 = vsel %vm1137_vm4, %v1123_v51, %v1133_v60 }
 0x101   : > { %v982_v15 = vpop.f32.mrf.mxu0 }
 0x102   : > { %1861 = vmatmul.msk.f32.gmra.mxu3 %vm346_vm1, %v1167_v19 }
 0x103   : > { %v756_v35 = vpop.f32.mrf.mxu2  ;;  %v683_v16 = vpop.f32.mrf.mxu1 }
 0x104   : > { %v790_v47 = vadd.f32 %v756_v35, %v681_v50  ;;  %1879 = vmatmul.msk.f32.gmra.mxu0 %vm346_vm1, %v1169_v40  ;;  %v684_v17 = vadd.f32 %v683_v16, %v2431_v26 }
 0x105   : > { %v890_v49 = vpop.f32.mrf.mxu3 }
 0x106   : > { %v924_v52 = vadd.f32 %v890_v49, %v790_v47  ;;  %1826 = vmatmul.msk.f32.gmra.mxu1 %vm346_vm1, %v2217_v21  ;;  %v1154_v21 = vsel %vm1137_vm4, %v1133_v60, %v1123_v51 }
 0x107   : > { %v1171_v26 = vmul.f32 %v2504_v2, %v1154_v21 }
 0x108   : > { %v2599_v43 = vadd.f32 %v982_v15, %v924_v52  ;;  %1844 = vmatmul.msk.f32.gmra.mxu2 %vm346_vm1, %v1142_v41  ;;  %v1125_v52 = vrot.slane %v2244_v32, 1 }
 0x109   : > { %v985_v45 = vpop.f32.mrf.mxu0 }
 0x10a   : > { %1862 = vmatmul.msk.f32.gmra.mxu3 %vm346_vm1, %v1143_v37 }
 0x10b   : > { %v759_v57 = vpop.f32.mrf.mxu2  ;;  %v686_v39 = vpop.f32.mrf.mxu1 }
 0x10c   : > { %v791_v34 = vadd.f32 %v759_v57, %v684_v17  ;;  %1880 = vmatmul.msk.f32.gmra.mxu0 %vm346_vm1, %v1144_v38  ;;  %v687_v5 = vadd.f32 %v686_v39, %v2449_v36 }
 0x10d   : > { %v893_v63 = vpop.f32.mrf.mxu3 }
 0x10e   : > { %v925_v0 = vadd.f32 %v893_v63, %v791_v34  ;;  %1827 = vmatmul.msk.f32.gmra.mxu1 %vm346_vm1, %v2226_v23  ;;  %v1134_v23 = vrot.slane %v2177_v4, 1 }
 0x110   : > { %v2611_v41 = vadd.f32 %v985_v45, %v925_v0  ;;  %1845 = vmatmul.msk.f32.gmra.mxu2 %vm346_vm1, %v1167_v19  ;;  %v1145_v13 = vsel %vm1137_vm4, %v1124_v9, %v1134_v23 }
 0x111   : > { %v988_v11 = vpop.f32.mrf.mxu0 }
 0x112   : > { %1863 = vmatmul.msk.f32.gmra.mxu3 %vm346_vm1, %v1169_v40 }
 0x113   : > { %v762_v7 = vpop.f32.mrf.mxu2  ;;  %v689_v18 = vpop.f32.mrf.mxu1 }
 0x114   : > { %v792_v46 = vadd.f32 %v762_v7, %v687_v5  ;;  %1881 = vmatmul.msk.f32.gmra.mxu0 %vm346_vm1, %v1171_v26  ;;  %v690_v14 = vadd.f32 %v689_v18, %v2465_v44 }
 0x115   : > { %v896_v28 = vpop.f32.mrf.mxu3 }
 0x116   : > { %v926_v12 = vadd.f32 %v896_v28, %v792_v46  ;;  %1828 = vmatmul.msk.f32.gmra.mxu1 %vm346_vm1, %v2170_v1  ;;  %v1155_v1 = vsel %vm1137_vm4, %v1134_v23, %v1124_v9  ;;  %v1126_v9 = vrot.slane %v2427_v20, 1 }
 0x117   : > { %v1173_v44 = vmul.f32 %v2504_v2, %v1155_v1 }
 0x118   : > { %v2622_v19 = vadd.f32 %v988_v11, %v926_v12  ;;  %1846 = vmatmul.msk.f32.gmra.mxu2 %vm346_vm1, %v1143_v37 }
 0x119   : > { %v991_v36 = vpop.f32.mrf.mxu0 }
 0x11a   : > { %1864 = vmatmul.msk.f32.gmra.mxu3 %vm346_vm1, %v1144_v38 }
 0x11b   : > { %v765_v55 = vpop.f32.mrf.mxu2  ;;  %v692_v58 = vpop.f32.mrf.mxu1 }
 0x11c   : > { %v793_v3 = vadd.f32 %v765_v55, %v690_v14  ;;  %1882 = vmatmul.msk.f32.gmra.mxu0 %vm346_vm1, %v1145_v13  ;;  %v693_v16 = vadd.f32 %v692_v58, %v2486_v54 }
 0x11d   : > { %v899_v15 = vpop.f32.mrf.mxu3 }
 0x11e   : > { %v927_v50 = vadd.f32 %v899_v15, %v793_v3  ;;  %1829 = vmatmul.msk.f32.gmra.mxu1 %vm346_vm1, %v2177_v4  ;;  %v1135_v4 = vrot.slane %v2246_v33, 1 }
 0x120   : > { %v2634_v37 = vadd.f32 %v991_v36, %v927_v50  ;;  %1847 = vmatmul.msk.f32.gmra.mxu2 %vm346_vm1, %v1169_v40  ;;  %v1146_v17 = vsel %vm1137_vm4, %v1125_v52, %v1135_v4 }
 0x121   : > { %v994_v35 = vpop.f32.mrf.mxu0 }
 0x122   : > { %1865 = vmatmul.msk.f32.gmra.mxu3 %vm346_vm1, %v1171_v26 }
 0x123   : > { %v768_v47 = vpop.f32.mrf.mxu2  ;;  %v695_v49 = vpop.f32.mrf.mxu1 }
 0x124   : > { %v794_v51 = vadd.f32 %v768_v47, %v693_v16  ;;  %1883 = vmatmul.msk.f32.gmra.mxu0 %vm346_vm1, %v1173_v44  ;;  %v696_v57 = vadd.f32 %v695_v49, %v2437_v29 }
 0x125   : > { %v902_v60 = vpop.f32.mrf.mxu3 }
 0x126   : > { %v928_v45 = vadd.f32 %v902_v60, %v794_v51  ;;  %1830 = vmatmul.msk.f32.gmra.mxu1 %vm346_vm1, %v2244_v32  ;;  %v1156_v32 = vsel %vm1137_vm4, %v1135_v4, %v1125_v52 }
 0x127   : > { %v1175_v29 = vmul.f32 %v2504_v2, %v1156_v32 }
 0x128   : > { %v2645_v40 = vadd.f32 %v994_v35, %v928_v45  ;;  %1848 = vmatmul.msk.f32.gmra.mxu2 %vm346_vm1, %v1144_v38  ;;  %v2693_v45 = vld [vmem:[%s2799_s4] ss:$0 sm:$0xff] }
 0x129   : > { %v997_v54 = vpop.f32.mrf.mxu0 }
 0x12a   : > { %1866 = vmatmul.msk.f32.gmra.mxu3 %vm346_vm1, %v1145_v13 }
 0x12b   : > { %v771_v39 = vpop.f32.mrf.mxu2  ;;  %v698_v34 = vpop.f32.mrf.mxu1 }
 0x12c   : > { %v795_v63 = vadd.f32 %v771_v39, %v696_v57  ;;  %1884 = vmatmul.msk.f32.gmra.mxu0 %vm346_vm1, %v1146_v17  ;;  %v699_v5 = vadd.f32 %v698_v34, %v2456_v42 }
 0x12d   : > { %v905_v21 = vpop.f32.mrf.mxu3 }
 0x12e   : > { %v929_v0 = vadd.f32 %v905_v21, %v795_v63  ;;  %1831 = vmatmul.msk.f32.gmra.mxu1 %vm346_vm1, %v2246_v33  ;;  %v1136_v33 = vrot.slane %v2429_v22, 1 }
 0x130   : > { %v2657_v38 = vadd.f32 %v997_v54, %v929_v0  ;;  %1849 = vmatmul.msk.f32.gmra.mxu2 %vm346_vm1, %v1171_v26  ;;  %v1147_v12 = vsel %vm1137_vm4, %v1126_v9, %v1136_v33 }
 0x131   : > { %v1000_v11 = vpop.f32.mrf.mxu0 }
 0x132   : > { %1867 = vmatmul.msk.f32.gmra.mxu3 %vm346_vm1, %v1173_v44 }
 0x133   : > { %v774_v7 = vpop.f32.mrf.mxu2  ;;  %v701_v18 = vpop.f32.mrf.mxu1 }
 0x134   : > { %v796_v46 = vadd.f32 %v774_v7, %v699_v5  ;;  %1885 = vmatmul.msk.f32.gmra.mxu0 %vm346_vm1, %v1175_v29  ;;  %v702_v36 = vadd.f32 %v701_v18, %v2471_v56 }
 0x135   : > { %v908_v28 = vpop.f32.mrf.mxu3 }
 0x136   : > { %v930_v23 = vadd.f32 %v908_v28, %v796_v46  ;;  %1832 = vmatmul.msk.f32.gmra.mxu1 %vm346_vm1, %v2427_v20  ;;  %v1157_v20 = vsel %vm1137_vm4, %v1136_v33, %v1126_v9 }
 0x137   : > { %v1177_v56 = vmul.f32 %v2504_v2, %v1157_v20 }
 0x138   : > { %v2668_v26 = vadd.f32 %v1000_v11, %v930_v23  ;;  %1850 = vmatmul.msk.f32.gmra.mxu2 %vm346_vm1, %v1145_v13 }
 0x139   : > { %v1003_v42 = vpop.f32.mrf.mxu0 }
 0x13a   : > { %1868 = vmatmul.msk.f32.gmra.mxu3 %vm346_vm1, %v1146_v17 }
 0x13b   : > { %v777_v14 = vpop.f32.mrf.mxu2  ;;  %v704_v55 = vpop.f32.mrf.mxu1 }
 0x13c   : > { %v797_v58 = vadd.f32 %v777_v14, %v702_v36  ;;  %1886 = vmatmul.msk.f32.gmra.mxu0 %vm346_vm1, %v1147_v12  ;;  %v705_v50 = vadd.f32 %v704_v55, %v2492_v61 }
 0x13d   : > { %v911_v3 = vpop.f32.mrf.mxu3 }
 0x13e   : > { %v931_v15 = vadd.f32 %v911_v3, %v797_v58  ;;  %1833 = vmatmul.msk.f32.gmra.mxu1 %vm346_vm1, %v2429_v22 }
 0x140   : > { %v2680_v13 = vadd.f32 %v1003_v42, %v931_v15  ;;  %1851 = vmatmul.msk.f32.gmra.mxu2 %vm346_vm1, %v1173_v44 }
 0x141   : > { %v1006_v1 = vpop.f32.mrf.mxu0 }
 0x142   : > { %1869 = vmatmul.msk.f32.gmra.mxu3 %vm346_vm1, %v1175_v29 }
 0x143   : > { %v780_v35 = vpop.f32.mrf.mxu2  ;;  %v1053_v16 = vpop.f32.mrf.mxu1 }
 0x144   : > { %v798_v47 = vadd.f32 %v780_v35, %v705_v50  ;;  %1887 = vmatmul.msk.f32.gmra.mxu0 %vm346_vm1, %v1177_v56  ;;  %v1101_v44 = vadd.f32 %v1053_v16, %v2520_v30 }
 0x145   : > { %v914_v27 = vpop.f32.mrf.mxu3 }
 0x146   : > { %v932_v49 = vadd.f32 %v914_v27, %v798_v47  ;;  %v1500_v27 = vld [vmem:[%s2072_s17 + $0x20] sm:$0xff] }
 0x148   : > { %v2687_v22 = vadd.f32 %v1006_v1, %v932_v49 }
 0x149   : > { %v1432_v51 = vpop.f32.mrf.mxu0 }
 0x14b   : > { %v1248_v60 = vpop.f32.mrf.mxu2  ;;  %v1056_v2 = vpop.f32.mrf.mxu1 }
 0x14c   : > { %v1296_v52 = vadd.f32 %v1248_v60, %v1101_v44  ;;  %v1102_v57 = vadd.f32 %v1056_v2, %v2530_v59 }
 0x14d   : > { %v1340_v4 = vpop.f32.mrf.mxu3 }
 0x14e   : > { %v1388_v61 = vadd.f32 %v1340_v4, %v1296_v52 }
 0x150   : > { %v1480_v54 = vadd.f32 %v1432_v51, %v1388_v61 }
 0x151   : > { %v1435_v17 = vpop.f32.mrf.mxu0 }
 0x152   : > { %v1516_v39 = vadd.f32 %v2693_v45, %v1480_v54  ;;  %v1501_v54 = vld [vmem:[%s2072_s17 + $0x28] sm:$0xff] }
 0x153   : > { %v1251_v30 = vpop.f32.mrf.mxu2  ;;  %v1059_v34 = vpop.f32.mrf.mxu1 }
 0x154   : > { %v1532_v63 = vadd.f32 %v1516_v39, %v2098_v24  ;;  %v1297_v21 = vadd.f32 %v1251_v30, %v1102_v57  ;;  %v1103_v11 = vadd.f32 %v1059_v34, %v2542_v8 }
 0x155   : > { %v1343_v32 = vpop.f32.mrf.mxu3 }
 0x156   : > { %1548 = vst.msk [vmem:[%s2701_s29] sm:$0xff] %vm346_vm1, %v1532_v63  ;;  %v1389_v0 = vadd.f32 %v1343_v32, %v1297_v21 }
 0x158   : > { %v1481_v29 = vadd.f32 %v1435_v17, %v1389_v0 }
 0x159   : > { %v1438_v59 = vpop.f32.mrf.mxu0 }
 0x15a   : > { %v1517_v5 = vadd.f32 %v2693_v45, %v1481_v29  ;;  %v1502_v29 = vld [vmem:[%s2072_s17 + $0x30] sm:$0xff] }
 0x15b   : > { %v1254_v7 = vpop.f32.mrf.mxu2  ;;  %v1062_v18 = vpop.f32.mrf.mxu1 }
 0x15c   : > { %v1533_v46 = vadd.f32 %v1517_v5, %v2101_v25  ;;  %v1298_v28 = vadd.f32 %v1254_v7, %v1103_v11  ;;  %v1104_v42 = vadd.f32 %v1062_v18, %v2553_v10 }
 0x15d   : > { %v1346_v9 = vpop.f32.mrf.mxu3 }
 0x15e   : > { %1549 = vst.msk [vmem:[%s2701_s29 + $0x8] sm:$0xff] %vm346_vm1, %v1533_v46  ;;  %v1390_v24 = vadd.f32 %v1346_v9, %v1298_v28 }
 0x160   : > { %v1482_v33 = vadd.f32 %v1438_v59, %v1390_v24 }
 0x161   : > { %v1441_v23 = vpop.f32.mrf.mxu0 }
 0x162   : > { %v1518_v12 = vadd.f32 %v2693_v45, %v1482_v33  ;;  %v1503_v33 = vld [vmem:[%s2072_s17 + $0x38] sm:$0xff] }
 0x163   : > { %v1257_v36 = vpop.f32.mrf.mxu2  ;;  %v1065_v8 = vpop.f32.mrf.mxu1 }
 0x164   : > { %v1534_v14 = vadd.f32 %v1518_v12, %v2135_v48  ;;  %v1299_v55 = vadd.f32 %v1257_v36, %v1104_v42  ;;  %v1105_v15 = vadd.f32 %v1065_v8, %v2565_v6 }
 0x165   : > { %v1349_v58 = vpop.f32.mrf.mxu3 }
 0x166   : > { %1550 = vst.msk [vmem:[%s2701_s29 + $0x10] sm:$0xff] %vm346_vm1, %v1534_v14  ;;  %v1391_v25 = vadd.f32 %v1349_v58, %v1299_v55 }
 0x168   : > { %v1483_v3 = vadd.f32 %v1441_v23, %v1391_v25 }
 0x169   : > { %v1444_v20 = vpop.f32.mrf.mxu0 }
 0x16a   : > { %v1519_v56 = vadd.f32 %v2693_v45, %v1483_v3  ;;  %v1504_v3 = vld [vmem:[%s2072_s17 + $0x40] sm:$0xff] }
 0x16b   : > { %v1260_v10 = vpop.f32.mrf.mxu2  ;;  %v1068_v1 = vpop.f32.mrf.mxu1 }
 0x16c   : > { %v1535_v50 = vadd.f32 %v1519_v56, %v2145_v53  ;;  %v1300_v35 = vadd.f32 %v1260_v10, %v1105_v15  ;;  %v1106_v51 = vadd.f32 %v1068_v1, %v2576_v31 }
 0x16d   : > { %v1352_v16 = vpop.f32.mrf.mxu3 }
 0x16e   : > { %1551 = vst.msk [vmem:[%s2701_s29 + $0x18] sm:$0xff] %vm346_vm1, %v1535_v50  ;;  %v1392_v48 = vadd.f32 %v1352_v16, %v1300_v35 }
 0x170   : > { %v1484_v47 = vadd.f32 %v1444_v20, %v1392_v48 }
 0x171   : > { %v1447_v49 = vpop.f32.mrf.mxu0 }
 0x172   : > { %v1520_v6 = vadd.f32 %v2693_v45, %v1484_v47  ;;  %v1505_v47 = vld [vmem:[%s2072_s17 + $0x48] sm:$0xff] }
 0x173   : > { %v1263_v44 = vpop.f32.mrf.mxu2  ;;  %v1071_v60 = vpop.f32.mrf.mxu1 }
 0x174   : > { %v1536_v2 = vadd.f32 %v1520_v6, %v1500_v27  ;;  %v1301_v52 = vadd.f32 %v1263_v44, %v1106_v51  ;;  %v1107_v57 = vadd.f32 %v1071_v60, %v2588_v62 }
 0x175   : > { %v1355_v4 = vpop.f32.mrf.mxu3 }
 0x176   : > { %1552 = vst.msk [vmem:[%s2701_s29 + $0x20] sm:$0xff] %vm346_vm1, %v1536_v2  ;;  %v1393_v53 = vadd.f32 %v1355_v4, %v1301_v52 }
 0x178   : > { %v1485_v61 = vadd.f32 %v1447_v49, %v1393_v53  ;;  %v1506_v53 = vld [vmem:[%s2072_s17 + $0x50] sm:$0xff] }
 0x179   : > { %v1450_v17 = vpop.f32.mrf.mxu0 }
 0x17a   : > { %v1521_v39 = vadd.f32 %v2693_v45, %v1485_v61 }
 0x17b   : > { %v1266_v31 = vpop.f32.mrf.mxu2  ;;  %v1074_v30 = vpop.f32.mrf.mxu1 }
 0x17c   : > { %v1537_v34 = vadd.f32 %v1521_v39, %v1501_v54  ;;  %v1302_v63 = vadd.f32 %v1266_v31, %v1107_v57  ;;  %v1108_v11 = vadd.f32 %v1074_v30, %v2599_v43 }
 0x17d   : > { %v1358_v21 = vpop.f32.mrf.mxu3 }
 0x17e   : > { %1553 = vst.msk [vmem:[%s2701_s29 + $0x28] sm:$0xff] %vm346_vm1, %v1537_v34  ;;  %v1394_v32 = vadd.f32 %v1358_v21, %v1302_v63  ;;  %v1507_v21 = vld [vmem:[%s2072_s17 + $0x58] sm:$0xff] }
 0x180   : > { %v1486_v0 = vadd.f32 %v1450_v17, %v1394_v32 }
 0x181   : > { %v1453_v59 = vpop.f32.mrf.mxu0 }
 0x182   : > { %v1522_v5 = vadd.f32 %v2693_v45, %v1486_v0 }
 0x183   : > { %v1269_v62 = vpop.f32.mrf.mxu2  ;;  %v1077_v7 = vpop.f32.mrf.mxu1 }
 0x184   : > { %v1538_v18 = vadd.f32 %v1522_v5, %v1502_v29  ;;  %v1303_v46 = vadd.f32 %v1269_v62, %v1108_v11  ;;  %v1109_v42 = vadd.f32 %v1077_v7, %v2611_v41 }
 0x185   : > { %v1361_v28 = vpop.f32.mrf.mxu3 }
 0x186   : > { %1554 = vst.msk [vmem:[%s2701_s29 + $0x30] sm:$0xff] %vm346_vm1, %v1538_v18  ;;  %v1395_v9 = vadd.f32 %v1361_v28, %v1303_v46  ;;  %v1508_v46 = vld [vmem:[%s2072_s17 + $0x60] sm:$0xff] }
 0x188   : > { %v1487_v24 = vadd.f32 %v1453_v59, %v1395_v9 }
 0x189   : > { %v1456_v23 = vpop.f32.mrf.mxu0 }
 0x18a   : > { %v1523_v12 = vadd.f32 %v2693_v45, %v1487_v24 }
 0x18b   : > { %v1272_v43 = vpop.f32.mrf.mxu2  ;;  %v1080_v36 = vpop.f32.mrf.mxu1 }
 0x18c   : > { %v1539_v8 = vadd.f32 %v1523_v12, %v1503_v33  ;;  %v1304_v14 = vadd.f32 %v1272_v43, %v1109_v42  ;;  %v1110_v15 = vadd.f32 %v1080_v36, %v2622_v19 }
 0x18d   : > { %v1364_v55 = vpop.f32.mrf.mxu3 }
 0x18e   : > { %1555 = vst.msk [vmem:[%s2701_s29 + $0x38] sm:$0xff] %vm346_vm1, %v1539_v8  ;;  %v1396_v58 = vadd.f32 %v1364_v55, %v1304_v14  ;;  %v1509_v8 = vld [vmem:[%s2072_s17 + $0x68] sm:$0xff] }
 0x190   : > { %v1488_v25 = vadd.f32 %v1456_v23, %v1396_v58 }
 0x191   : > { %v1459_v20 = vpop.f32.mrf.mxu0 }
 0x192   : > { %v1524_v56 = vadd.f32 %v2693_v45, %v1488_v25 }
 0x193   : > { %v1275_v41 = vpop.f32.mrf.mxu2  ;;  %v1083_v10 = vpop.f32.mrf.mxu1 }
 0x194   : > { %v1540_v1 = vadd.f32 %v1524_v56, %v1504_v3  ;;  %v1305_v50 = vadd.f32 %v1275_v41, %v1110_v15  ;;  %v1111_v49 = vadd.f32 %v1083_v10, %v2634_v37  ;;  %v1510_v10 = vld [vmem:[%s2072_s17 + $0x70] sm:$0xff] }
 0x195   : > { %v1367_v35 = vpop.f32.mrf.mxu3 }
 0x196   : > { %1556 = vst.msk [vmem:[%s2701_s29 + $0x40] sm:$0xff] %vm346_vm1, %v1540_v1  ;;  %v1397_v16 = vadd.f32 %v1367_v35, %v1305_v50 }
 0x198   : > { %v1489_v48 = vadd.f32 %v1459_v20, %v1397_v16 }
 0x199   : > { %v1462_v27 = vpop.f32.mrf.mxu0 }
 0x19a   : > { %v1525_v51 = vadd.f32 %v2693_v45, %v1489_v48 }
 0x19b   : > { %v1278_v19 = vpop.f32.mrf.mxu2  ;;  %v1086_v6 = vpop.f32.mrf.mxu1 }
 0x19c   : > { %v1541_v44 = vadd.f32 %v1525_v51, %v1505_v47  ;;  %v1306_v60 = vadd.f32 %v1278_v19, %v1111_v49  ;;  %v1112_v54 = vadd.f32 %v1086_v6, %v2645_v40  ;;  %v1511_v51 = vld [vmem:[%s2072_s17 + $0x78] sm:$0xff] }
 0x19d   : > { %v1370_v2 = vpop.f32.mrf.mxu3 }
 0x19e   : > { %1557 = vst.msk [vmem:[%s2701_s29 + $0x48] sm:$0xff] %vm346_vm1, %v1541_v44  ;;  %v1398_v52 = vadd.f32 %v1370_v2, %v1306_v60 }
 0x1a0   : > { %v1490_v4 = vadd.f32 %v1462_v27, %v1398_v52 }
 0x1a1   : > { %v1465_v61 = vpop.f32.mrf.mxu0 }
 0x1a2   : > { %v1526_v17 = vadd.f32 %v2693_v45, %v1490_v4 }
 0x1a3   : > { %v1281_v37 = vpop.f32.mrf.mxu2  ;;  %v1089_v57 = vpop.f32.mrf.mxu1 }
 0x1a4   : > { %v1542_v39 = vadd.f32 %v1526_v17, %v1506_v53  ;;  %v1307_v31 = vadd.f32 %v1281_v37, %v1112_v54  ;;  %v1113_v0 = vadd.f32 %v1089_v57, %v2657_v38 }
 0x1a5   : > { %v1373_v30 = vpop.f32.mrf.mxu3 }
 0x1a6   : > { %1558 = vst.msk [vmem:[%s2701_s29 + $0x50] sm:$0xff] %vm346_vm1, %v1542_v39  ;;  %v1399_v34 = vadd.f32 %v1373_v30, %v1307_v31 }
 0x1a8   : > { %v1491_v63 = vadd.f32 %v1465_v61, %v1399_v34 }
 0x1a9   : > { %v1468_v32 = vpop.f32.mrf.mxu0 }
 0x1aa   : > { %v1527_v29 = vadd.f32 %v2693_v45, %v1491_v63 }
 0x1ab   : > { %v1284_v40 = vpop.f32.mrf.mxu2  ;;  %v1092_v59 = vpop.f32.mrf.mxu1 }
 0x1ac   : > { %v1543_v11 = vadd.f32 %v1527_v29, %v1507_v21  ;;  %v1308_v5 = vadd.f32 %v1284_v40, %v1113_v0  ;;  %v1114_v9 = vadd.f32 %v1092_v59, %v2668_v26 }
 0x1ad   : > { %v1376_v62 = vpop.f32.mrf.mxu3 }
 0x1ae   : > { %1559 = vst.msk [vmem:[%s2701_s29 + $0x58] sm:$0xff] %vm346_vm1, %v1543_v11  ;;  %v1400_v7 = vadd.f32 %v1376_v62, %v1308_v5 }
 0x1b0   : > { %v1492_v18 = vadd.f32 %v1468_v32, %v1400_v7 }
 0x1b1   : > { %v1471_v28 = vpop.f32.mrf.mxu0 }
 0x1b2   : > { %v1528_v24 = vadd.f32 %v2693_v45, %v1492_v18 }
 0x1b3   : > { %v1287_v38 = vpop.f32.mrf.mxu2  ;;  %v1095_v42 = vpop.f32.mrf.mxu1 }
 0x1b4   : > { %v1544_v33 = vadd.f32 %v1528_v24, %v1508_v46  ;;  %v1309_v23 = vadd.f32 %v1287_v38, %v1114_v9  ;;  %v1115_v14 = vadd.f32 %v1095_v42, %v2680_v13 }
 0x1b5   : > { %v1379_v12 = vpop.f32.mrf.mxu3 }
 0x1b6   : > { %1560 = vst.msk [vmem:[%s2701_s29 + $0x60] sm:$0xff] %vm346_vm1, %v1544_v33  ;;  %v1401_v43 = vadd.f32 %v1379_v12, %v1309_v23 }
 0x1b8   : > { %v1493_v36 = vadd.f32 %v1471_v28, %v1401_v43 }
 0x1b9   : > { %v1474_v26 = vpop.f32.mrf.mxu0 }
 0x1ba   : > { %v1529_v55 = vadd.f32 %v2693_v45, %v1493_v36 }
 0x1bb   : > { %v1290_v58 = vpop.f32.mrf.mxu2  ;;  %v1098_v56 = vpop.f32.mrf.mxu1 }
 0x1bc   : > { %v1545_v25 = vadd.f32 %v1529_v55, %v1509_v8  ;;  %v1310_v3 = vadd.f32 %v1290_v58, %v1115_v14  ;;  %v1116_v1 = vadd.f32 %v1098_v56, %v2687_v22 }
 0x1bd   : > { %v1382_v20 = vpop.f32.mrf.mxu3 }
 0x1be   : > { %1561 = vst.msk [vmem:[%s2701_s29 + $0x68] sm:$0xff] %vm346_vm1, %v1545_v25  ;;  %v1402_v15 = vadd.f32 %v1382_v20, %v1310_v3 }
 0x1c0   : > { %v1494_v41 = vadd.f32 %v1474_v26, %v1402_v15 }
 0x1c1   : > { %v1477_v47 = vpop.f32.mrf.mxu0 }
 0x1c2   : > { %v1530_v13 = vadd.f32 %v2693_v45, %v1494_v41 }
 0x1c3   : > { %v1293_v50 = vpop.f32.mrf.mxu2 }
 0x1c4   : > { %v1546_v35 = vadd.f32 %v1530_v13, %v1510_v10  ;;  %v1311_v16 = vadd.f32 %v1293_v50, %v1116_v1 }
 0x1c5   : > { %v1385_v48 = vpop.f32.mrf.mxu3 }
 0x1c6   : > { %1562 = vst.msk [vmem:[%s2701_s29 + $0x70] sm:$0xff] %vm346_vm1, %v1546_v35  ;;  %v1403_v27 = vadd.f32 %v1385_v48, %v1311_v16 }
 0x1c8   : > { %v1495_v49 = vadd.f32 %v1477_v47, %v1403_v27 }
 0x1ca   : > { %v1531_v19 = vadd.f32 %v2693_v45, %v1495_v49 }
 0x1cc   : > { %v1547_v6 = vadd.f32 %v1531_v19, %v1511_v51 }
 0x1ce   : > { %1563 = vst.msk [vmem:[%s2701_s29 + $0x78] sm:$0xff] %vm346_vm1, %v1547_v6 }
 0x1cf PF: > { %s15_s22 = sadd.s32 1, %s1973_s22   ;;  %s2801_s18 = smov %s1965_s20 }
 0x1d0   : > { %p12_p8 = scmp.ge.s32.totalorder %s15_s22, 6   ;;  %s2802_s19 = smov %s1969_s21 }
 0x1d1   : > { %s2803_s20 = smov %s2806_s23  ;;  %s2804_s21 = smov %s2810_s24 }
 0x1d2   :  { %14 = sbr.rel (!%p12_p8) target bundleno = 3 (0x3), region = 86 }

</bundles_post_ra>
